<compile_context>
chip_gen: v5e
topology: v5e:2x2
jax: 0.10.0
libtpu: 0.0.40
codegen_flags: <defaults>
</compile_context>

<pallas_src>
import functools

import jax
import jax.numpy as jnp
from jax.experimental import pallas as pl
from jax.experimental.pallas import tpu as pltpu


# ----------------------------------------------------------------------------
# Pallas kernel
# ----------------------------------------------------------------------------
def _attention_kernel(src_ref, tgt_ref, wq_ref, wk_ref, wv_ref,
                      bq_ref, bk_ref, bv_ref, gamma_ref,
                      out_ref, attn_ref, k_sc, v_sc):
    """Fused GlobalAttentionBlock for one (batch, query-tile) grid point.

    src_ref/tgt_ref: (1, C, N)   wq/wk: (C8, C)  wv: (C, C)
    bq/bk: (C8, 1)  bv: (C, 1)   gamma: (1, 1)
    out_ref: (1, C, TQ)          attn_ref: (1, TQ, N)
    scratch: k_sc (C8, N) f32, v_sc (C, N) f32  (persist across query tiles)
    """
    qi = pl.program_id(1)
    tq = out_ref.shape[-1]

    # k / v projections: once per batch element, kept resident in VMEM.
    @pl.when(qi == 0)
    def _():
        src = src_ref[0].astype(jnp.float32)          # (C, N)
        tgt = tgt_ref[0].astype(jnp.float32)          # (C, N)
        k_sc[...] = (jnp.dot(wk_ref[...], tgt,
                             preferred_element_type=jnp.float32)
                     + bk_ref[...])
        v_sc[...] = (jnp.dot(wv_ref[...], src,
                             preferred_element_type=jnp.float32)
                     + bv_ref[...])

    col0 = pl.multiple_of(qi * tq, tq)
    src_cols = src_ref[0, :, pl.ds(col0, tq)].astype(jnp.float32)   # (C, TQ)
    tgt_cols = tgt_ref[0, :, pl.ds(col0, tq)].astype(jnp.float32)   # (C, TQ)

    # q for this query tile: (C8, TQ)
    q = (jnp.dot(wq_ref[...], src_cols, preferred_element_type=jnp.float32)
         + bq_ref[...])

    # energy[t, j] = sum_c q[c, t] * k[c, j]   -> (TQ, N), lane-dense output.
    energy = jax.lax.dot_general(
        q, k_sc[...], dimension_numbers=(((0,), (0,)), ((), ())),
        preferred_element_type=jnp.float32)

    # Row softmax (numerically stable); reductions are along lanes.
    m = jnp.max(energy, axis=-1, keepdims=True)
    e = jnp.exp(energy - m)
    attn = e / jnp.sum(e, axis=-1, keepdims=True)
    attn_ref[0] = attn.astype(attn_ref.dtype)

    # out[c, t] = sum_j v[c, j] * attn[t, j]   -> (C, TQ), lane-dense output.
    out = jax.lax.dot_general(
        v_sc[...], attn, dimension_numbers=(((1,), (1,)), ((), ())),
        preferred_element_type=jnp.float32)
    out_ref[0] = (gamma_ref[...] * out + tgt_cols).astype(out_ref.dtype)


# ----------------------------------------------------------------------------
# Wrapper
# ----------------------------------------------------------------------------
def global_attention_block(source, target, params, *, tile_q=128):
    """source/target: (B, C, W, H).  Returns (out (B,C,W,H), attention (B,N,N))."""
    B, C, W, H = source.shape
    assert C % 8 == 0, "in_dim must be divisible by 8 (query/key use C // 8)"
    N = W * H
    C8 = C // 8

    tq = tile_q if N % tile_q == 0 else N
    nq = N // tq

    src = source.reshape(B, C, N)
    tgt = target.reshape(B, C, N)
    wq = params["wq"].reshape(C8, C)
    wk = params["wk"].reshape(C8, C)
    wv = params["wv"].reshape(C, C)
    bq = params["bq"].reshape(C8, 1)
    bk = params["bk"].reshape(C8, 1)
    bv = params["bv"].reshape(C, 1)
    gamma = params["gamma"].reshape(1, 1).astype(jnp.float32)

    out, attn = pl.pallas_call(
        _attention_kernel,
        out_shape=(
            jax.ShapeDtypeStruct((B, C, N), source.dtype),
            jax.ShapeDtypeStruct((B, N, N), jnp.float32),
        ),
        grid=(B, nq),
        in_specs=[
            pl.BlockSpec((1, C, N), lambda b, q: (b, 0, 0)),    # source
            pl.BlockSpec((1, C, N), lambda b, q: (b, 0, 0)),    # target
            pl.BlockSpec((C8, C), lambda b, q: (0, 0)),         # wq
            pl.BlockSpec((C8, C), lambda b, q: (0, 0)),         # wk
            pl.BlockSpec((C, C), lambda b, q: (0, 0)),          # wv
            pl.BlockSpec((C8, 1), lambda b, q: (0, 0)),         # bq
            pl.BlockSpec((C8, 1), lambda b, q: (0, 0)),         # bk
            pl.BlockSpec((C, 1), lambda b, q: (0, 0)),          # bv
            pl.BlockSpec((1, 1), lambda b, q: (0, 0)),          # gamma
        ],
        out_specs=[
            pl.BlockSpec((1, C, tq), lambda b, q: (b, 0, q)),   # out (NCHW-flat)
            pl.BlockSpec((1, tq, N), lambda b, q: (b, q, 0)),   # attention
        ],
        scratch_shapes=[
            pltpu.VMEM((C8, N), jnp.float32),                   # k
            pltpu.VMEM((C, N), jnp.float32),                    # v
        ],
        compiler_params=pltpu.CompilerParams(
            dimension_semantics=("parallel", "arbitrary"),
            vmem_limit_bytes=64 * 1024 * 1024,
        ),
    )(src, tgt, wq, wk, wv, bq, bk, bv, gamma)

    return out.reshape(B, C, W, H), attn


# ----------------------------------------------------------------------------
# Parameters (deterministic, synthetic) — mimic the PyTorch module's 1x1 convs.
# ----------------------------------------------------------------------------
def make_params(key, c):
    c8 = c // 8
    ks = jax.random.split(key, 6)
    return {
        "wq": jax.random.normal(ks[0], (c8, c, 1, 1), jnp.float32) * 0.1,
        "bq": jax.random.normal(ks[1], (c8,), jnp.float32) * 0.01,
        "wk": jax.random.normal(ks[2], (c8, c, 1, 1), jnp.float32) * 0.1,
        "bk": jax.random.normal(ks[3], (c8,), jnp.float32) * 0.01,
        "wv": jax.random.normal(ks[4], (c, c, 1, 1), jnp.float32) * 0.1,
        "bv": jax.random.normal(ks[5], (c,), jnp.float32) * 0.01,
        # PyTorch initializes gamma to 0; use a nonzero value here so the
        # attention path actually contributes to `out` in the check.
        "gamma": jnp.full((1,), 0.7, jnp.float32),
    }


# ----------------------------------------------------------------------------
# Pure-JAX reference (for correctness check)
# ----------------------------------------------------------------------------
def ref_global_attention(source, target, params):
    B, C, W, H = source.shape
    N = W * H
    C8 = C // 8
    src = source.reshape(B, C, N)
    tgt = target.reshape(B, C, N)
    wq = params["wq"].reshape(C8, C)
    wk = params["wk"].reshape(C8, C)
    wv = params["wv"].reshape(C, C)
    q = jnp.einsum("oc,bcn->bon", wq, src) + params["bq"].reshape(1, C8, 1)
    k = jnp.einsum("oc,bcn->bon", wk, tgt) + params["bk"].reshape(1, C8, 1)
    v = jnp.einsum("oc,bcn->bon", wv, src) + params["bv"].reshape(1, C, 1)
    energy = jnp.einsum("bci,bcj->bij", q, k)            # (B, N, N)
    attn = jax.nn.softmax(energy, axis=-1)
    out = jnp.einsum("bcj,bij->bci", v, attn)            # (B, C, N)
    out = params["gamma"].reshape(()) * out + tgt
    return out.reshape(B, C, W, H), attn


# ----------------------------------------------------------------------------
if __name__ == "__main__":
    key = jax.random.PRNGKey(0)
    k_s, k_t, k_p = jax.random.split(key, 3)

    # Small shapes: batch=2, in_dim=32 (C//8 = 4), spatial 16x16 -> N = 256.
    B, C, Wd, Ht = 2, 32, 16, 16
    source = jax.random.normal(k_s, (B, C, Wd, Ht), jnp.float32)
    target = jax.random.normal(k_t, (B, C, Wd, Ht), jnp.float32)
    params = make_params(k_p, C)

    fwd = jax.jit(functools.partial(global_attention_block, params=params))
    out, attn = fwd(source, target)
    out = jax.block_until_ready(out)
    attn = jax.block_until_ready(attn)

    assert out.shape == (B, C, Wd, Ht), out.shape
    assert attn.shape == (B, Wd * Ht, Wd * Ht), attn.shape

    ref_out, ref_attn = ref_global_attention(source, target, params)
    ref_out = jax.block_until_ready(ref_out)
    assert jnp.allclose(out, ref_out, rtol=2e-3, atol=2e-3), (
        float(jnp.max(jnp.abs(out - ref_out))))
    assert jnp.allclose(attn, ref_attn, rtol=2e-3, atol=2e-3), (
        float(jnp.max(jnp.abs(attn - ref_attn))))

    print("KERNEL_OK")
</pallas_src>

<mosaic_0001>
module attributes {stable_mosaic.version = 11 : i64} {
  func.func @_attention_kernel(%arg0: i32, %arg1: i32, %arg2: memref<1x32x256xf32, #tpu.memory_space<vmem>>, %arg3: memref<1x32x256xf32, #tpu.memory_space<vmem>>, %arg4: memref<4x32xf32, #tpu.memory_space<vmem>>, %arg5: memref<4x32xf32, #tpu.memory_space<vmem>>, %arg6: memref<32x32xf32, #tpu.memory_space<vmem>>, %arg7: memref<4x1xf32, #tpu.memory_space<vmem>>, %arg8: memref<4x1xf32, #tpu.memory_space<vmem>>, %arg9: memref<32x1xf32, #tpu.memory_space<vmem>>, %arg10: memref<1x1xf32, #tpu.memory_space<vmem>>, %arg11: memref<1x32x128xf32, #tpu.memory_space<vmem>>, %arg12: memref<1x128x256xf32, #tpu.memory_space<vmem>>, %arg13: memref<4x256xf32, #tpu.memory_space<vmem>>, %arg14: memref<32x256xf32, #tpu.memory_space<vmem>>) attributes {dimension_semantics = [#tpu.dimension_semantics<parallel>, #tpu.dimension_semantics<arbitrary>], iteration_bounds = array<i64: 2, 2>, scalar_prefetch = 0 : i64, scratch_operands = 2 : i64, tpu.core_type = #tpu.core_type<tc>, window_params = [{transform_indices = @transform_0, window_bounds = array<i64: 1, 32, 256>}, {transform_indices = @transform_1, window_bounds = array<i64: 1, 32, 256>}, {pipeline_mode = #tpu.pipeline_mode<synchronous>, transform_indices = @transform_2, window_bounds = array<i64: 4, 32>}, {pipeline_mode = #tpu.pipeline_mode<synchronous>, transform_indices = @transform_3, window_bounds = array<i64: 4, 32>}, {pipeline_mode = #tpu.pipeline_mode<synchronous>, transform_indices = @transform_4, window_bounds = array<i64: 32, 32>}, {pipeline_mode = #tpu.pipeline_mode<synchronous>, transform_indices = @transform_5, window_bounds = array<i64: 4, 1>}, {pipeline_mode = #tpu.pipeline_mode<synchronous>, transform_indices = @transform_6, window_bounds = array<i64: 4, 1>}, {pipeline_mode = #tpu.pipeline_mode<synchronous>, transform_indices = @transform_7, window_bounds = array<i64: 32, 1>}, {pipeline_mode = #tpu.pipeline_mode<synchronous>, transform_indices = @transform_8, window_bounds = array<i64: 1, 1>}, {transform_indices = @transform_9, window_bounds = array<i64: 1, 32, 128>}, {transform_indices = @transform_10, window_bounds = array<i64: 1, 128, 256>}]} {
    %c0_i32 = arith.constant 0 : i32
    %0 = arith.cmpi eq, %arg1, %c0_i32 : i32
    %1 = arith.extui %0 : i1 to i32
    %c0_i32_0 = arith.constant 0 : i32
    %2 = arith.cmpi ne, %1, %c0_i32_0 : i32
    scf.if %2 {
      %c0_24 = arith.constant 0 : index
      %c0_25 = arith.constant 0 : index
      %c0_26 = arith.constant 0 : index
      %39 = vector.load %arg2[%c0_24, %c0_25, %c0_26] : memref<1x32x256xf32, #tpu.memory_space<vmem>>, vector<1x32x256xf32>
      %40 = vector.shape_cast %39 : vector<1x32x256xf32> to vector<32x256xf32>
      %c0_27 = arith.constant 0 : index
      %c0_28 = arith.constant 0 : index
      %c0_29 = arith.constant 0 : index
      %41 = vector.load %arg3[%c0_27, %c0_28, %c0_29] : memref<1x32x256xf32, #tpu.memory_space<vmem>>, vector<1x32x256xf32>
      %42 = vector.shape_cast %41 : vector<1x32x256xf32> to vector<32x256xf32>
      %c0_30 = arith.constant 0 : index
      %c0_31 = arith.constant 0 : index
      %43 = vector.load %arg5[%c0_30, %c0_31] : memref<4x32xf32, #tpu.memory_space<vmem>>, vector<4x32xf32>
      %cst_32 = arith.constant dense<0.000000e+00> : vector<4x256xf32>
      %44 = tpu.matmul %43, %42, %cst_32 {dimension_numbers = #tpu.dot_dimension_numbers<[1], [0], [0], [1], [0, 0, 1, 1], [], []>} : vector<4x32xf32>, vector<32x256xf32>, vector<4x256xf32> -> vector<4x256xf32>
      %c0_33 = arith.constant 0 : index
      %c0_34 = arith.constant 0 : index
      %45 = vector.load %arg8[%c0_33, %c0_34] : memref<4x1xf32, #tpu.memory_space<vmem>>, vector<4x1xf32>
      %46 = vector.broadcast %45 : vector<4x1xf32> to vector<4x256xf32>
      %47 = arith.addf %44, %46 : vector<4x256xf32>
      %c0_35 = arith.constant 0 : index
      %c0_36 = arith.constant 0 : index
      %48 = vector.load %arg13[%c0_35, %c0_36] : memref<4x256xf32, #tpu.memory_space<vmem>>, vector<4x256xf32>
      tpu.vector_store %arg13[%c0_35, %c0_36], %47 {strides = array<i32>} : memref<4x256xf32, #tpu.memory_space<vmem>>, vector<4x256xf32>,
      %c0_37 = arith.constant 0 : index
      %c0_38 = arith.constant 0 : index
      %49 = vector.load %arg6[%c0_37, %c0_38] : memref<32x32xf32, #tpu.memory_space<vmem>>, vector<32x32xf32>
      %cst_39 = arith.constant dense<0.000000e+00> : vector<32x256xf32>
      %50 = tpu.matmul %49, %40, %cst_39 {dimension_numbers = #tpu.dot_dimension_numbers<[1], [0], [0], [1], [0, 0, 1, 1], [], []>} : vector<32x32xf32>, vector<32x256xf32>, vector<32x256xf32> -> vector<32x256xf32>
      %c0_40 = arith.constant 0 : index
      %c0_41 = arith.constant 0 : index
      %51 = vector.load %arg9[%c0_40, %c0_41] : memref<32x1xf32, #tpu.memory_space<vmem>>, vector<32x1xf32>
      %52 = vector.broadcast %51 : vector<32x1xf32> to vector<32x256xf32>
      %53 = arith.addf %50, %52 : vector<32x256xf32>
      %c0_42 = arith.constant 0 : index
      %c0_43 = arith.constant 0 : index
      %54 = vector.load %arg14[%c0_42, %c0_43] : memref<32x256xf32, #tpu.memory_space<vmem>>, vector<32x256xf32>
      tpu.vector_store %arg14[%c0_42, %c0_43], %53 {strides = array<i32>} : memref<32x256xf32, #tpu.memory_space<vmem>>, vector<32x256xf32>,
    } else {
    }
    %c128_i32 = arith.constant 128 : i32
    %3 = arith.muli %arg1, %c128_i32 : i32
    %4 = tpu.assume_multiple %3, 128 : i32
    %c0 = arith.constant 0 : index
    %c0_1 = arith.constant 0 : index
    %5 = arith.index_cast %4 : i32 to index
    %6 = vector.load %arg2[%c0, %c0_1, %5] : memref<1x32x256xf32, #tpu.memory_space<vmem>>, vector<1x32x128xf32>
    %7 = vector.shape_cast %6 : vector<1x32x128xf32> to vector<32x128xf32>
    %c0_2 = arith.constant 0 : index
    %c0_3 = arith.constant 0 : index
    %8 = arith.index_cast %4 : i32 to index
    %9 = vector.load %arg3[%c0_2, %c0_3, %8] : memref<1x32x256xf32, #tpu.memory_space<vmem>>, vector<1x32x128xf32>
    %10 = vector.shape_cast %9 : vector<1x32x128xf32> to vector<32x128xf32>
    %c0_4 = arith.constant 0 : index
    %c0_5 = arith.constant 0 : index
    %11 = vector.load %arg4[%c0_4, %c0_5] : memref<4x32xf32, #tpu.memory_space<vmem>>, vector<4x32xf32>
    %cst = arith.constant dense<0.000000e+00> : vector<4x128xf32>
    %12 = tpu.matmul %11, %7, %cst {dimension_numbers = #tpu.dot_dimension_numbers<[1], [0], [0], [1], [0, 0, 1, 1], [], []>} : vector<4x32xf32>, vector<32x128xf32>, vector<4x128xf32> -> vector<4x128xf32>
    %c0_6 = arith.constant 0 : index
    %c0_7 = arith.constant 0 : index
    %13 = vector.load %arg7[%c0_6, %c0_7] : memref<4x1xf32, #tpu.memory_space<vmem>>, vector<4x1xf32>
    %14 = vector.broadcast %13 : vector<4x1xf32> to vector<4x128xf32>
    %15 = arith.addf %12, %14 : vector<4x128xf32>
    %c0_8 = arith.constant 0 : index
    %c0_9 = arith.constant 0 : index
    %16 = vector.load %arg13[%c0_8, %c0_9] : memref<4x256xf32, #tpu.memory_space<vmem>>, vector<4x256xf32>
    %cst_10 = arith.constant dense<0.000000e+00> : vector<128x256xf32>
    %17 = tpu.matmul %15, %16, %cst_10 {dimension_numbers = #tpu.dot_dimension_numbers<[0], [0], [1], [1], [0, 1, 1, 1], [], []>} : vector<4x128xf32>, vector<4x256xf32>, vector<128x256xf32> -> vector<128x256xf32>
    %cst_11 = arith.constant dense<0xFF800000> : vector<128xf32>
    %18 = vector.multi_reduction <maximumf>, %17, %cst_11 [1] : vector<128x256xf32> to vector<128xf32>
    %19 = vector.shape_cast %18 : vector<128xf32> to vector<128x1xf32>
    %20 = vector.broadcast %19 : vector<128x1xf32> to vector<128x256xf32>
    %21 = arith.subf %17, %20 : vector<128x256xf32>
    %22 = math.exp %21 : vector<128x256xf32>
    %cst_12 = arith.constant dense<0.000000e+00> : vector<128xf32>
    %23 = vector.multi_reduction <add>, %22, %cst_12 [1] : vector<128x256xf32> to vector<128xf32>
    %24 = vector.shape_cast %23 : vector<128xf32> to vector<128x1xf32>
    %25 = vector.broadcast %24 : vector<128x1xf32> to vector<128x256xf32>
    %26 = arith.divf %22, %25 : vector<128x256xf32>
    %c0_13 = arith.constant 0 : index
    %c0_14 = arith.constant 0 : index
    %c0_15 = arith.constant 0 : index
    %27 = vector.load %arg12[%c0_13, %c0_14, %c0_15] : memref<1x128x256xf32, #tpu.memory_space<vmem>>, vector<1x128x256xf32>
    %28 = vector.shape_cast %27 : vector<1x128x256xf32> to vector<128x256xf32>
    %29 = vector.shape_cast %26 : vector<128x256xf32> to vector<1x128x256xf32>
    tpu.vector_store %arg12[%c0_13, %c0_14, %c0_15], %29 {strides = array<i32>} : memref<1x128x256xf32, #tpu.memory_space<vmem>>, vector<1x128x256xf32>,
    %c0_16 = arith.constant 0 : index
    %c0_17 = arith.constant 0 : index
    %30 = vector.load %arg14[%c0_16, %c0_17] : memref<32x256xf32, #tpu.memory_space<vmem>>, vector<32x256xf32>
    %cst_18 = arith.constant dense<0.000000e+00> : vector<32x128xf32>
    %31 = tpu.matmul %30, %26, %cst_18 {dimension_numbers = #tpu.dot_dimension_numbers<[1], [1], [0], [0], [0, 0, 1, 0], [], []>} : vector<32x256xf32>, vector<128x256xf32>, vector<32x128xf32> -> vector<32x128xf32>
    %c0_19 = arith.constant 0 : index
    %c0_20 = arith.constant 0 : index
    %32 = vector.load %arg10[%c0_19, %c0_20] : memref<1x1xf32, #tpu.memory_space<vmem>>, vector<1x1xf32>
    %33 = vector.broadcast %32 : vector<1x1xf32> to vector<32x128xf32>
    %34 = arith.mulf %33, %31 : vector<32x128xf32>
    %35 = arith.addf %34, %10 : vector<32x128xf32>
    %c0_21 = arith.constant 0 : index
    %c0_22 = arith.constant 0 : index
    %c0_23 = arith.constant 0 : index
    %36 = vector.load %arg11[%c0_21, %c0_22, %c0_23] : memref<1x32x128xf32, #tpu.memory_space<vmem>>, vector<1x32x128xf32>
    %37 = vector.shape_cast %36 : vector<1x32x128xf32> to vector<32x128xf32>
    %38 = vector.shape_cast %35 : vector<32x128xf32> to vector<1x32x128xf32>
    tpu.vector_store %arg11[%c0_21, %c0_22, %c0_23], %38 {strides = array<i32>} : memref<1x32x128xf32, #tpu.memory_space<vmem>>, vector<1x32x128xf32>,
    return
  }
  func.func @transform_0(%arg0: i32, %arg1: i32) -> (i32, i32, i32) {
    %c0_i32 = arith.constant 0 : i32
    %c0_i32_0 = arith.constant 0 : i32
    %c0_i32_1 = arith.constant 0 : i32
    return %arg0, %c0_i32, %c0_i32_0 : i32, i32, i32
  }
  func.func @transform_1(%arg0: i32, %arg1: i32) -> (i32, i32, i32) {
    %c0_i32 = arith.constant 0 : i32
    %c0_i32_0 = arith.constant 0 : i32
    %c0_i32_1 = arith.constant 0 : i32
    return %arg0, %c0_i32, %c0_i32_0 : i32, i32, i32
  }
  func.func @transform_2(%arg0: i32, %arg1: i32) -> (i32, i32) {
    %c0_i32 = arith.constant 0 : i32
    %c0_i32_0 = arith.constant 0 : i32
    %c0_i32_1 = arith.constant 0 : i32
    return %c0_i32, %c0_i32_0 : i32, i32
  }
  func.func @transform_3(%arg0: i32, %arg1: i32) -> (i32, i32) {
    %c0_i32 = arith.constant 0 : i32
    %c0_i32_0 = arith.constant 0 : i32
    %c0_i32_1 = arith.constant 0 : i32
    return %c0_i32, %c0_i32_0 : i32, i32
  }
  func.func @transform_4(%arg0: i32, %arg1: i32) -> (i32, i32) {
    %c0_i32 = arith.constant 0 : i32
    %c0_i32_0 = arith.constant 0 : i32
    %c0_i32_1 = arith.constant 0 : i32
    return %c0_i32, %c0_i32_0 : i32, i32
  }
  func.func @transform_5(%arg0: i32, %arg1: i32) -> (i32, i32) {
    %c0_i32 = arith.constant 0 : i32
    %c0_i32_0 = arith.constant 0 : i32
    %c0_i32_1 = arith.constant 0 : i32
    return %c0_i32, %c0_i32_0 : i32, i32
  }
  func.func @transform_6(%arg0: i32, %arg1: i32) -> (i32, i32) {
    %c0_i32 = arith.constant 0 : i32
    %c0_i32_0 = arith.constant 0 : i32
    %c0_i32_1 = arith.constant 0 : i32
    return %c0_i32, %c0_i32_0 : i32, i32
  }
  func.func @transform_7(%arg0: i32, %arg1: i32) -> (i32, i32) {
    %c0_i32 = arith.constant 0 : i32
    %c0_i32_0 = arith.constant 0 : i32
    %c0_i32_1 = arith.constant 0 : i32
    return %c0_i32, %c0_i32_0 : i32, i32
  }
  func.func @transform_8(%arg0: i32, %arg1: i32) -> (i32, i32) {
    %c0_i32 = arith.constant 0 : i32
    %c0_i32_0 = arith.constant 0 : i32
    %c0_i32_1 = arith.constant 0 : i32
    return %c0_i32, %c0_i32_0 : i32, i32
  }
  func.func @transform_9(%arg0: i32, %arg1: i32) -> (i32, i32, i32) {
    %c0_i32 = arith.constant 0 : i32
    %c0_i32_0 = arith.constant 0 : i32
    return %arg0, %c0_i32, %arg1 : i32, i32, i32
  }
  func.func @transform_10(%arg0: i32, %arg1: i32) -> (i32, i32, i32) {
    %c0_i32 = arith.constant 0 : i32
    %c0_i32_0 = arith.constant 0 : i32
    return %arg0, %arg1, %c0_i32 : i32, i32, i32
  }
}

</mosaic_0001>

<bundles_post_ra>
// kernel: global_attention_block.1
= control target key start
LH: loop header
LB: loop body
LE: loop exit
PB: predicated region body
PF: predicated region fallthrough
CT: control target
= control target key end

     0   :  { %s2710_s0 = inlined_call_operand.vmem [shape: f32[2,32,256], index: 0, kind: input, shape index: {}]   ;;  %s2711_s1 = inlined_call_operand.vmem [shape: f32[2,32,256], index: 1, kind: input, shape index: {}]   ;;  %s2712_s2 = inlined_call_operand.vmem [shape: f32[4,32], index: 2, kind: input, shape index: {}]   ;;  %s2713_s3 = inlined_call_operand.vmem [shape: f32[4,32], index: 3, kind: input, shape index: {}]   ;;  %s2714_s4 = inlined_call_operand.vmem [shape: f32[32,32], index: 4, kind: input, shape index: {}]   ;;  %s2715_s5 = inlined_call_operand.vmem [shape: f32[4,1], index: 5, kind: input, shape index: {}]   ;;  %s2716_s6 = inlined_call_operand.vmem [shape: f32[4,1], index: 6, kind: input, shape index: {}]   ;;  %s2717_s7 = inlined_call_operand.vmem [shape: f32[32,1], index: 7, kind: input, shape index: {}]   ;;  %s2718_s8 = inlined_call_operand.<no memory space> [shape: f32[1,1], index: 8, kind: input, shape index: {}]   ;;  %s2719_s9 = inlined_call_operand.vmem [shape: f32[2,32,256], index: 9, kind: output, shape index: {0}]   ;;  %s2720_s10 = inlined_call_operand.hbm [shape: f32[2,256,256], index: 10, kind: output, shape index: {1}]  }
   0x1   :  { %2725 = sst [smem:[#allocation14_spill]] %s2710_s0  ;;  %v16_v0 = vstv %s2718_s8 }
   0x2   :  { %17 = vst [vmem:[#allocation4] sm:$0x1] %v16_v0 }
   0x3   :  { %18 = vsyncpa [#allocation7], 0 }
   0x4   :  { %20 = vsyncpa [#allocation7 + $0x1], 0  ;;  %s2034_s15 = smov 0   ;;  %s2036_s16 = smov 0  }
   0x5   :  { %s2038_s17 = smov 0   ;;  %s2040_s18 = smov 0  }
   0x6   :  { %s2042_s19 = smov 0   ;;  %s2044_s20 = smov 0  }
   0x7   :  { %s2046_s21 = smov 0   ;;  %s2048_s22 = smov 0  }
   0x8 LB: > { %2726 = sst [smem:[#allocation9_spill]] %s1962_s20  ;;  %s1617_s8 = sadd.s32 4294967295, %s1970_s22   ;;  %s1970_s22 = sphi %s2048_s22, %s26_s22   ;;  %s1966_s21 = sphi %s2046_s21, %s2745_s21   ;;  %s1962_s20 = sphi %s2044_s20, %s2744_s20   ;;  %s1958_s19 = sphi %s2042_s19, %s2743_s19   ;;  %s1954_s18 = sphi %s2040_s18, %s2742_s18   ;;  %s1950_s17 = sphi %s2038_s17, %s2748_s17   ;;  %s1946_s16 = sphi %s2036_s16, %s2747_s16   ;;  %s1942_s15 = sphi %s2034_s15, %s2746_s15  }
   0x9   : > { %2727 = sst [smem:[#allocation10_spill]] %s1966_s21  ;;  %s1618_s23 = sadd.s32 4294967294, %s1970_s22  }
   0xa   : > { %s35_s24 = sadd.s32 1, %s1962_s20  ;;  %s38_s25 = sadd.s32 1, %s1966_s21 }
   0xb   : > { %p36_p0 = scmp.ge.s32.totalorder %s35_s24, 2  ;;  %p256_p1 = scmp.ne.s32.totalorder %s1950_s17, %s1946_s16 }
   0xc   : > { %p257_p2 = scmp.eq.s32.totalorder %s1617_s8, 3  ;;  %p290_p5 = scmp.ne.s32.totalorder %s1946_s16, %s1942_s15 }
   0xd   : > { %s2750_s24 = smov (%p36_p0, %s35_s24), 0  ;;  %s2752_s25 = smov (!%p36_p0, %s38_s25), %s1966_s21 }
   0xe   : > { %2728 = sst [smem:[#allocation11_spill]] %s2750_s24  ;;  %s242_s26 = ssub.s32 %s1962_s20, %s2750_s24 }
   0xf   : > { %p2085_p3 = por %p257_p2, %p256_p1  ;;  %p40_p4 = scmp.ge.s32.totalorder %s2752_s25, 2 }
  0x10   : > { %p291_p6 = scmp.eq.s32.totalorder %s1618_s23, 3  ;;  %p1621_p7 = scmp.ge.s32.totalorder %s1970_s22, 1 }
  0x11   : > { %s2754_s25 = smov (%p40_p4, %s2752_s25), 0  ;;  %p346_p9 = scmp.lt.s32.totalorder %s1970_s22, 5 }
  0x12   : > { %2730 = sst [smem:[#allocation12_spill]] %s2754_s25  ;;  %p2094_p8 = por %p291_p6, %p290_p5 }
  0x13   : > { %s241_s29 = ssub.s32 %s1966_s21, %s2754_s25  ;;  %s246_s30 = sadd.s32 1, %s1950_s17 }
  0x14   : > { %s243_s11 = sor.u32 %s242_s26, %s241_s29  ;;  %p347_p10 = pnand %p1621_p7, %p346_p9 }
  0x15   : > { %p244_p11 = scmp.eq.s32.totalorder %s243_s11, 0  ;;  %s2106_s13 = sand.u32 (!%p347_p10), 1, %s1946_s16  }
  0x16   : > { %350 = sbr.rel (%p347_p10) target bundleno = 1290 (0x50a), region = 56  ;;  %p393_p12 = scmp.lt.s32.totalorder (!%p347_p10), %s1958_s19, 1 }
  0x17   : > { %s2103_s12 = scalar_select %p244_p11, %s1950_s17, %s246_s30  }
  0x18   : > { %s1622_s14 = sshll.u32 (!%p347_p10), %s2106_s13, 5  ;;  %s1623_s8 = sshll.u32 (!%p347_p10), %s2106_s13, 8 }
  0x19   : > { %2732 = sst [smem:[#allocation13_spill]] %s2103_s12  ;;  %s2122_s20 = scalar_lea.vmem (!%p347_p10), [#allocation5], %s1622_s14 }
  0x1a   : > { %s2733_s0 = sld [smem:[#allocation14_spill]] (!%p347_p10)  ;;  %s2124_s12 = scalar_lea.vmem (!%p347_p10), [#allocation6], %s1623_s8 }
  0x1b   : > { %s394_s23 = scalar_select %p393_p12, %s1958_s19, 1 }
  0x1c   : > { %p1628_p13 = scmp.ne.s32.totalorder %s1954_s18, 0 }
  0x1d   : > { %s1687_s24 = sshll.u32 %s394_s23, 6 }
  0x1e   : > { %s2120_s11 = scalar_lea.vmem %s2711_s1, %s1687_s24  ;;  %407 = sbr.rel (%p1628_p13) target bundleno = 195 (0xc3), region = 60 }
  0x20   : > { %s2115_s26 = scalar_lea.vmem %s2733_s0, %s1687_s24 }
  0x23   : > { %v414_v1 = vld [vmem:[%s2115_s26 + $0x30] sm:$0xff]  ;;  %v415_v2 = vld [vmem:[%s2115_s26 + $0x38] sm:$0xff]  ;;  %v412_v3 = vld [vmem:[%s2115_s26 + $0x20] sm:$0xff]  ;;  %v1972_v9 = vmov 0   ;;  %vm431_vm0 = vcmask 261120   ;;  %vm478_vm1 = vcmask 1043456  }
  0x24   : > { %1690 = vmatpush.msra.mxu2 %v414_v1  ;;  %1694 = vmatpush.msra.mxu3 %v415_v2  ;;  %v413_v4 = vld [vmem:[%s2115_s26 + $0x28] sm:$0xff]  ;;  %v410_v5 = vld [vmem:[%s2115_s26 + $0x10] sm:$0xff]  ;;  %v411_v6 = vld [vmem:[%s2115_s26 + $0x18] sm:$0xff] }
  0x25   : > { %v422_v7 = vld [vmem:[%s2120_s11 + $0x30] sm:$0xff]  ;;  %v423_v8 = vld [vmem:[%s2120_s11 + $0x38] sm:$0xff]  ;;  %1775 = vset.pattern.permute.xlu1 %v1972_v9  ;;  %1774 = vset.pattern.permute.xlu0 %v1972_v9  ;;  %v420_v10 = vld [vmem:[%s2120_s11 + $0x20] sm:$0xff] }
  0x26   : > { %1691 = vmatpush.msra.mxu2 %v412_v3  ;;  %1695 = vmatpush.msra.mxu3 %v413_v4  ;;  %v408_v11 = vld [vmem:[%s2115_s26] sm:$0xff]  ;;  %v409_v12 = vld [vmem:[%s2115_s26 + $0x8] sm:$0xff]  ;;  %v418_v15 = vld [vmem:[%s2120_s11 + $0x10] sm:$0xff] }
  0x27   : > { %447 = vmatpush.msra.mxu0 %v422_v7  ;;  %467 = vmatpush.msra.mxu1 %v423_v8  ;;  %v421_v13 = vld [vmem:[%s2120_s11 + $0x28] sm:$0xff]  ;;  %v419_v16 = vld [vmem:[%s2120_s11 + $0x18] sm:$0xff]  ;;  %v425_v18 = vld [vmem:[%s2716_s6] sm:$0xf] }
  0x28   : > { %1692 = vmatpush.msra.mxu2 %v410_v5  ;;  %1696 = vmatpush.msra.mxu3 %v411_v6  ;;  %v483_v14 = vld [vmem:[%s2714_s4 + $0x8] sm:$0xff]  ;;  %v416_v19 = vld [vmem:[%s2120_s11] sm:$0xff]  ;;  %v484_v22 = vld [vmem:[%s2714_s4 + $0x10] sm:$0xff] }
  0x29   : > { %448 = vmatpush.msra.mxu0 %v420_v10  ;;  %468 = vmatpush.msra.mxu1 %v421_v13  ;;  %v487_v17 = vld [vmem:[%s2717_s7 + $0x8] sm:$0xff]  ;;  %v424_v21 = vld [vmem:[%s2713_s3] sm:$0xf]  ;;  %v488_v23 = vld [vmem:[%s2717_s7 + $0x10] sm:$0xff] }
  0x2a   : > { %1693 = vmatpush.msra.mxu2 %v408_v11  ;;  %1697 = vmatpush.msra.mxu3 %v409_v12  ;;  %v417_v20 = vld [vmem:[%s2120_s11 + $0x8] sm:$0xff]  ;;  %v486_v24 = vld [vmem:[%s2717_s7] sm:$0xff]  ;;  %v489_v26 = vld [vmem:[%s2717_s7 + $0x18] sm:$0xff] }
  0x2b   : > { %1632 = vmatmul.msk.f32.vlgmr.msra.gmra.mxu2 %vm431_vm0, %v483_v14  ;;  %1636 = vmatmul.msk.f32.vlgmr.msra.gmra.mxu3 %vm431_vm0, %v483_v14  ;;  %v482_v25 = vld [vmem:[%s2714_s4] sm:$0xff]  ;;  %v485_v27 = vld [vmem:[%s2714_s4 + $0x18] sm:$0xff] }
  0x2c   : > { %449 = vmatpush.msra.mxu0 %v418_v15  ;;  %469 = vmatpush.msra.mxu1 %v419_v16 }
  0x2d   : > { %497 = vperm.xlu1 %1775, %v487_v17   ;;  %428 = vperm.xlu0 %1774, %v425_v18  }
  0x2e   : > { %450 = vmatpush.msra.mxu0 %v416_v19  ;;  %470 = vmatpush.msra.mxu1 %v417_v20 }
  0x2f   : > { %1629 = vmatmul.msk.f32.vlgmr.msra.gmra.mxu0 %vm431_vm0, %v424_v21  ;;  %1630 = vmatmul.msk.f32.vlgmr.msra.gmra.mxu1 %vm431_vm0, %v424_v21 }
  0x30   : > { %534 = vmatpush.msrb.mxu0 %v414_v1  ;;  %563 = vmatpush.msrb.mxu1 %v415_v2 }
  0x31   : > { %1776 = vset.pattern.permute.xlu2 %v1972_v9 }
  0x32   : > { %535 = vmatpush.msrb.mxu0 %v412_v3  ;;  %564 = vmatpush.msrb.mxu1 %v413_v4 }
  0x33   : > { %1633 = vmatmul.msk.f32.gmra.mxu2 %vm431_vm0, %v484_v22  ;;  %1637 = vmatmul.msk.f32.gmra.mxu3 %vm431_vm0, %v484_v22 }
  0x34   : > { %536 = vmatpush.msrb.mxu0 %v410_v5  ;;  %565 = vmatpush.msrb.mxu1 %v411_v6 }
  0x35   : > { %502 = vperm.xlu1 %1775, %v488_v23   ;;  %492 = vperm.xlu0 %1774, %v486_v24  }
  0x36   : > { %537 = vmatpush.msrb.mxu0 %v408_v11  ;;  %566 = vmatpush.msrb.mxu1 %v409_v12 }
  0x37   : > { %1631 = vmatmul.msk.f32.vlgmr.msrb.gmra.mxu0 %vm431_vm0, %v482_v25  ;;  %1635 = vmatmul.msk.f32.vlgmr.msrb.gmra.mxu1 %vm431_vm0, %v482_v25 }
  0x38   : > { %507 = vperm.xlu2 %1776, %v489_v26  }
  0x3b   : > { %1634 = vmatmul.msk.f32.gmra.mxu2 %vm431_vm0, %v485_v27  ;;  %1638 = vmatmul.msk.f32.gmra.mxu3 %vm431_vm0, %v485_v27 }
  0x92   : > { %v508_v50 = vpop.permute.xlu2 %507 }
  0x9f   : > { %v429_v28 = vpop.permute.xlu0 %428  ;;  %v498_v29 = vpop.permute.xlu1 %497 }
  0xa7   : > { %v493_v40 = vpop.permute.xlu0 %492  ;;  %v503_v41 = vpop.permute.xlu1 %502 }
  0xac   : > { %v452_v30 = vpop.f32.mrf.mxu0  ;;  %v472_v31 = vpop.f32.mrf.mxu1 }
  0xad   : > { %v453_v32 = vadd.f32 %v452_v30, %v429_v28  ;;  %v473_v33 = vadd.f32 %v472_v31, %v429_v28 }
  0xae   : > { %v542_v34 = vpop.f32.mrf.mxu2  ;;  %v571_v35 = vpop.f32.mrf.mxu3 }
  0xaf   : > { %v477_v36 = vrot.slane %v473_v33, 4  ;;  %v543_v37 = vadd.f32 %v542_v34, %v498_v29  ;;  %v572_v38 = vadd.f32 %v571_v35, %v498_v29 }
  0xb1   : > { %v479_v39 = vsel %vm478_vm1, %v453_v32, %v477_v36  ;;  %582 = vst [vmem:[#allocation3 + $0x18] sm:$0xff] %v543_v37 }
  0xb2   : > { %481 = vst [vmem:[#allocation2] sm:$0xff] %v479_v39 }
  0xb3   : > { %583 = vst [vmem:[#allocation3 + $0x10] sm:$0xff] %v572_v38 }
  0xb4   : > { %v539_v42 = vpop.f32.mrf.mxu0  ;;  %v568_v43 = vpop.f32.mrf.mxu1 }
  0xb5   : > { %v540_v44 = vadd.f32 %v539_v42, %v493_v40  ;;  %v569_v45 = vadd.f32 %v568_v43, %v493_v40 }
  0xb6   : > { %v545_v46 = vpop.f32.mrf.mxu2  ;;  %v574_v47 = vpop.f32.mrf.mxu3 }
  0xb7   : > { %580 = vst [vmem:[#allocation3 + $0x30] sm:$0xff] %v540_v44  ;;  %v546_v48 = vadd.f32 %v545_v46, %v503_v41  ;;  %v575_v49 = vadd.f32 %v574_v47, %v503_v41 }
  0xb8   : > { %581 = vst [vmem:[#allocation3] sm:$0xff] %v569_v45 }
  0xb9   : > { %584 = vst [vmem:[#allocation3 + $0x8] sm:$0xff] %v546_v48 }
  0xba   : > { %585 = vst [vmem:[#allocation3 + $0x20] sm:$0xff] %v575_v49 }
  0xbe   : > { %v548_v51 = vpop.f32.mrf.mxu2  ;;  %v577_v52 = vpop.f32.mrf.mxu3 }
  0xbf   : > { %v549_v53 = vadd.f32 %v548_v51, %v508_v50  ;;  %v578_v54 = vadd.f32 %v577_v52, %v508_v50 }
  0xc1   : > { %586 = vst [vmem:[#allocation3 + $0x28] sm:$0xff] %v549_v53 }
  0xc2   : > { %587 = vst [vmem:[#allocation3 + $0x38] sm:$0xff] %v578_v54 }
  0xc3 PF: > { %s1639_s8 = sshll.u32 %s1954_s18, 7  ;;  %v1973_v55 = vmov 0   ;;  %v604_v56 = vld [vmem:[%s2715_s5] sm:$0xf]  ;;  %vm610_vm2 = vcmask 261120   ;;  %v634_v62 = vld [vmem:[#allocation2] sm:$0xff] }
  0xc4   : > { %s2184_s23 = sshra.s32 %s1639_s8, 7  ;;  %1777 = vset.pattern.permute.xlu0 %v1973_v55  ;;  %1778 = vset.pattern.permute.xlu2 %v1973_v55  ;;  %v603_v61 = vld [vmem:[%s2712_s2] sm:$0xf]  ;;  %668 = vst [vmem:[#allocation1] ss:$2 sm:$0xff] %v634_v62  ;;  %vm720_vm3 = vcmask 1043456  }
  0xc5   : > { %s1640_s21 = sshll.u32 %s2184_s23, 3  ;;  %607 = vperm.xlu0 %1777, %v604_v56   ;;  %vm671_vm4 = vcmask 31744   ;;  %s1679_s8 = sshll.u32 (%p2085_p3), %s1958_s19, 3 }
  0xc6   : > { %s592_s24 = scalar_lea.vmem %s2115_s26, %s1640_s21  ;;  %s598_s26 = scalar_lea.vmem %s2120_s11, %s1640_s21 }
  0xc7   : > { %v596_v57 = vld [vmem:[%s592_s24 + $0x30] sm:$0xff]  ;;  %v595_v58 = vld [vmem:[%s592_s24 + $0x20] sm:$0xff]  ;;  %s1433_s23 = sadd.s32 (%p2085_p3), %s1954_s18, %s1679_s8 }
  0xc8   : > { %626 = vmatpush.msra.mxu0 %v596_v57  ;;  %v594_v59 = vld [vmem:[%s592_s24 + $0x10] sm:$0xff]  ;;  %v593_v60 = vld [vmem:[%s592_s24] sm:$0xff]  ;;  %s1680_s29 = sshll.u32 (%p2085_p3), %s1433_s23, 3 }
  0xc9   : > { %s1435_s24 = scalar_lea.vmem (%p2085_p3), %s2719_s9, %s1680_s29 }
  0xca   : > { %627 = vmatpush.msra.mxu0 %v595_v58 }
  0xcb   : > { %v669_v63 = vld.sshfl [vmem:[#allocation1] sm:$0xff pattern:$0x75316420]  ;;  %v670_v0 = vld.sshfl [vmem:[#allocation1 + $0x8] sm:$0xff pattern:$0x75316420] }
  0xcc   : > { %628 = vmatpush.msra.mxu0 %v594_v59  ;;  %1643 = vmatpush.msk.msra.mxu1 %vm720_vm3, %v669_v63 }
  0xcd   : > { %1660 = vmatpush.msk.msra.mxu2 %vm720_vm3, %v670_v0 }
  0xce   : > { %629 = vmatpush.msra.mxu0 %v593_v60 }
  0xcf   : > { %1642 = vmatmul.msk.f32.vlgmr.msra.gmra.mxu0 %vm610_vm2, %v603_v61 }
 0x137   : > { %v608_v1 = vpop.permute.xlu0 %607 }
 0x14c   : > { %v631_v2 = vpop.f32.mrf.mxu0 }
 0x14d   : > { %v632_v3 = vadd.f32 %v631_v2, %v608_v1 }
 0x14f   : > { %635 = vxpose.xlu0.b32.start.end [1/1] (short) %v632_v3, 128 }
 0x1f3   : > { %v651_v4 = vpop.trf.xlu0 }
 0x1f4   : > { %1644 = vmatmul.msk.f32.vlgmr.msra.gmra.mxu1 %vm671_vm4, %v651_v4  ;;  %1661 = vmatmul.msk.f32.vlgmr.msra.gmra.mxu2 %vm671_vm4, %v651_v4 }
 0x1fb   : > { %v652_v5 = vpop.trf.xlu0 }
 0x1fc   : > { %1645 = vmatmul.msk.f32.gmra.mxu1 %vm671_vm4, %v652_v5  ;;  %1662 = vmatmul.msk.f32.gmra.mxu2 %vm671_vm4, %v652_v5 }
 0x203   : > { %v653_v6 = vpop.trf.xlu0 }
 0x204   : > { %1646 = vmatmul.msk.f32.gmra.mxu1 %vm671_vm4, %v653_v6  ;;  %1663 = vmatmul.msk.f32.gmra.mxu2 %vm671_vm4, %v653_v6 }
 0x20b   : > { %v654_v7 = vpop.trf.xlu0 }
 0x20c   : > { %1647 = vmatmul.msk.f32.gmra.mxu1 %vm671_vm4, %v654_v7  ;;  %1664 = vmatmul.msk.f32.gmra.mxu2 %vm671_vm4, %v654_v7 }
 0x213   : > { %v655_v8 = vpop.trf.xlu0 }
 0x214   : > { %1648 = vmatmul.msk.f32.gmra.mxu1 %vm671_vm4, %v655_v8  ;;  %1665 = vmatmul.msk.f32.gmra.mxu2 %vm671_vm4, %v655_v8 }
 0x21b   : > { %v656_v9 = vpop.trf.xlu0 }
 0x21c   : > { %1649 = vmatmul.msk.f32.gmra.mxu1 %vm671_vm4, %v656_v9  ;;  %1666 = vmatmul.msk.f32.gmra.mxu2 %vm671_vm4, %v656_v9 }
 0x223   : > { %v657_v10 = vpop.trf.xlu0 }
 0x224   : > { %1650 = vmatmul.msk.f32.gmra.mxu1 %vm671_vm4, %v657_v10  ;;  %1667 = vmatmul.msk.f32.gmra.mxu2 %vm671_vm4, %v657_v10 }
 0x22b   : > { %v658_v11 = vpop.trf.xlu0 }
 0x22c   : > { %1651 = vmatmul.msk.f32.gmra.mxu1 %vm671_vm4, %v658_v11  ;;  %1668 = vmatmul.msk.f32.gmra.mxu2 %vm671_vm4, %v658_v11 }
 0x233   : > { %v659_v12 = vpop.trf.xlu0 }
 0x234   : > { %1652 = vmatmul.msk.f32.gmra.mxu1 %vm671_vm4, %v659_v12  ;;  %1669 = vmatmul.msk.f32.gmra.mxu2 %vm671_vm4, %v659_v12 }
 0x23b   : > { %v660_v13 = vpop.trf.xlu0 }
 0x23c   : > { %1653 = vmatmul.msk.f32.gmra.mxu1 %vm671_vm4, %v660_v13  ;;  %1670 = vmatmul.msk.f32.gmra.mxu2 %vm671_vm4, %v660_v13 }
 0x243   : > { %v661_v14 = vpop.trf.xlu0 }
 0x244   : > { %1654 = vmatmul.msk.f32.gmra.mxu1 %vm671_vm4, %v661_v14  ;;  %1671 = vmatmul.msk.f32.gmra.mxu2 %vm671_vm4, %v661_v14 }
 0x24b   : > { %v662_v15 = vpop.trf.xlu0 }
 0x24c   : > { %1655 = vmatmul.msk.f32.gmra.mxu1 %vm671_vm4, %v662_v15  ;;  %1672 = vmatmul.msk.f32.gmra.mxu2 %vm671_vm4, %v662_v15 }
 0x253   : > { %v663_v16 = vpop.trf.xlu0 }
 0x254   : > { %1656 = vmatmul.msk.f32.gmra.mxu1 %vm671_vm4, %v663_v16  ;;  %1673 = vmatmul.msk.f32.gmra.mxu2 %vm671_vm4, %v663_v16 }
 0x25b   : > { %v664_v17 = vpop.trf.xlu0 }
 0x25c   : > { %1657 = vmatmul.msk.f32.gmra.mxu1 %vm671_vm4, %v664_v17  ;;  %1674 = vmatmul.msk.f32.gmra.mxu2 %vm671_vm4, %v664_v17 }
 0x263   : > { %v665_v18 = vpop.trf.xlu0 }
 0x264   : > { %1658 = vmatmul.msk.f32.gmra.mxu1 %vm671_vm4, %v665_v18  ;;  %1675 = vmatmul.msk.f32.gmra.mxu2 %vm671_vm4, %v665_v18 }
 0x26b   : > { %v666_v19 = vpop.trf.xlu0 }
 0x26c   : > { %1659 = vmatmul.msk.f32.gmra.mxu1 %vm671_vm4, %v666_v19  ;;  %1676 = vmatmul.msk.f32.gmra.mxu2 %vm671_vm4, %v666_v19 }
 0x271   : > { %v2228_v20 = vpop.f32.mrf.mxu1 }
 0x277   : > { %v2230_v21 = vpop.f32.mrf.mxu2 }
 0x278   : > { %v855_v3 = vmax.f32 %v2228_v20, %v2230_v21 }
 0x279   : > { %v2232_v22 = vpop.f32.mrf.mxu1 }
 0x27f   : > { %v2234_v23 = vpop.f32.mrf.mxu2 }
 0x280   : > { %v858_v2 = vmax.f32 %v2232_v22, %v2234_v23 }
 0x281   : > { %v2236_v24 = vpop.f32.mrf.mxu1 }
 0x287   : > { %v2238_v25 = vpop.f32.mrf.mxu2 }
 0x288   : > { %v861_v1 = vmax.f32 %v2236_v24, %v2238_v25 }
 0x289   : > { %v2240_v26 = vpop.f32.mrf.mxu1 }
 0x28f   : > { %v2242_v27 = vpop.f32.mrf.mxu2 }
 0x290   : > { %v864_v28 = vmax.f32 %v2240_v26, %v2242_v27 }
 0x291   : > { %v2246_v29 = vpop.f32.mrf.mxu1 }
 0x292   : > { %865 = vmax.xlane.f32.xlu0 %v864_v28 }
 0x297   : > { %v2248_v30 = vpop.f32.mrf.mxu2 }
 0x298   : > { %v867_v61 = vmax.f32 %v2246_v29, %v2248_v30 }
 0x299   : > { %v2250_v31 = vpop.f32.mrf.mxu1 }
 0x29f   : > { %v2252_v32 = vpop.f32.mrf.mxu2 }
 0x2a0   : > { %v870_v0 = vmax.f32 %v2250_v31, %v2252_v32 }
 0x2a1   : > { %v2254_v33 = vpop.f32.mrf.mxu1 }
 0x2a7   : > { %v2256_v34 = vpop.f32.mrf.mxu2 }
 0x2a8   : > { %v873_v59 = vmax.f32 %v2254_v33, %v2256_v34 }
 0x2a9   : > { %v2258_v35 = vpop.f32.mrf.mxu1 }
 0x2af   : > { %v2260_v36 = vpop.f32.mrf.mxu2 }
 0x2b0   : > { %v876_v63 = vmax.f32 %v2258_v35, %v2260_v36 }
 0x2b1   : > { %v2262_v37 = vpop.f32.mrf.mxu1 }
 0x2b7   : > { %v2264_v38 = vpop.f32.mrf.mxu2 }
 0x2b8   : > { %v879_v57 = vmax.f32 %v2262_v37, %v2264_v38 }
 0x2b9   : > { %v2266_v39 = vpop.f32.mrf.mxu1 }
 0x2bf   : > { %v2268_v40 = vpop.f32.mrf.mxu2 }
 0x2c0   : > { %v882_v62 = vmax.f32 %v2266_v39, %v2268_v40 }
 0x2c1   : > { %v772_v41 = vpop.f32.mrf.mxu1 }
 0x2c7   : > { %v837_v42 = vpop.f32.mrf.mxu2 }
 0x2c8   : > { %v885_v55 = vmax.f32 %v772_v41, %v837_v42 }
 0x2c9   : > { %v2270_v43 = vpop.f32.mrf.mxu1 }
 0x2cf   : > { %v2272_v44 = vpop.f32.mrf.mxu2 }
 0x2d0   : > { %v888_v60 = vmax.f32 %v2270_v43, %v2272_v44 }
 0x2d1   : > { %v778_v45 = vpop.f32.mrf.mxu1 }
 0x2d7   : > { %v843_v46 = vpop.f32.mrf.mxu2 }
 0x2d8   : > { %v891_v52 = vmax.f32 %v778_v45, %v843_v46 }
 0x2d9   : > { %v2274_v47 = vpop.f32.mrf.mxu1 }
 0x2df   : > { %v2276_v48 = vpop.f32.mrf.mxu2 }
 0x2e0   : > { %v894_v49 = vmax.f32 %v2274_v47, %v2276_v48 }
 0x2e1   : > { %v784_v50 = vpop.f32.mrf.mxu1 }
 0x2e2   : > { %895 = vmax.xlane.f32.xlu2 %v894_v49 }
 0x2e7   : > { %v2280_v51 = vpop.f32.mrf.mxu2 }
 0x2e8   : > { %v897_v58 = vmax.f32 %v784_v50, %v2280_v51 }
 0x2e9   : > { %v2282_v53 = vpop.f32.mrf.mxu1 }
 0x2ea   : > { %892 = vmax.xlane.f32.xlu2 %v891_v52 }
 0x2ef   : > { %v2284_v54 = vpop.f32.mrf.mxu2 }
 0x2f0   : > { %v900_v56 = vmax.f32 %v2282_v53, %v2284_v54 }
 0x2f2   : > { %886 = vmax.xlane.f32.xlu2 %v885_v55  ;;  %901 = vmax.xlane.f32.xlu1 %v900_v56 }
 0x2fa   : > { %880 = vmax.xlane.f32.xlu2 %v879_v57  ;;  %898 = vmax.xlane.f32.xlu1 %v897_v58 }
 0x302   : > { %874 = vmax.xlane.f32.xlu2 %v873_v59  ;;  %889 = vmax.xlane.f32.xlu1 %v888_v60 }
 0x30a   : > { %868 = vmax.xlane.f32.xlu2 %v867_v61  ;;  %883 = vmax.xlane.f32.xlu1 %v882_v62 }
 0x312   : > { %877 = vmax.xlane.f32.xlu1 %v876_v63 }
 0x31a   : > { %871 = vmax.xlane.f32.xlu1 %v870_v0 }
 0x322   : > { %862 = vmax.xlane.f32.xlu1 %v861_v1 }
 0x32a   : > { %859 = vmax.xlane.f32.xlu1 %v858_v2 }
 0x332   : > { %856 = vmax.xlane.f32.xlu1 %v855_v3 }
 0x355   : > { %v896_v4 = vpop.xlane.xlu2 %895 }
 0x356   : > { %v930_v3 = vsub.f32 %v2276_v48, %v896_v4 }
 0x35d   : > { %v893_v5 = vpop.xlane.xlu2 %892 }
 0x35e   : > { %v927_v6 = vsub.f32 %v778_v45, %v893_v5  ;;  %v928_v7 = vsub.f32 %v843_v46, %v893_v5 }
 0x360   : > { %v983_v8 = vmul.f32 1.442695, %v927_v6  ;;  %v985_v9 = vmul.f32 1.442695, %v928_v7  ;;  %v989_v7 = vmul.f32 1.442695, %v930_v3 }
 0x362   : > { %1780 = vpow2.f32 %v983_v8 }
 0x363   : > { %1782 = vpow2.f32 %v985_v9 }
 0x365   : > { %v887_v10 = vpop.xlane.xlu2 %886  ;;  %v902_v11 = vpop.xlane.xlu1 %901 }
 0x366   : > { %v923_v12 = vsub.f32 %v772_v41, %v887_v10  ;;  %v924_v13 = vsub.f32 %v837_v42, %v887_v10  ;;  %v933_v52 = vsub.f32 %v2282_v53, %v902_v11  ;;  %v934_v59 = vsub.f32 %v2284_v54, %v902_v11 }
 0x367   : > { %v929_v54 = vsub.f32 %v2274_v47, %v896_v4 }
 0x368   : > { %v2309_v14 = vpop.eup %1780  ;;  %v975_v15 = vmul.f32 1.442695, %v923_v12  ;;  %v977_v16 = vmul.f32 1.442695, %v924_v13 }
 0x369   : > { %v2311_v17 = vpop.eup %1782 }
 0x36a   : > { %1784 = vpow2.f32 %v975_v15  ;;  %v1035_v18 = vadd.f32 %v2311_v17, %v2309_v14 }
 0x36b   : > { %1786 = vpow2.f32 %v977_v16 }
 0x36c   : > { %1036 = vadd.xlane.f32.xlu1 %v1035_v18 }
 0x36d   : > { %v881_v19 = vpop.xlane.xlu2 %880  ;;  %v899_v28 = vpop.xlane.xlu1 %898 }
 0x36e   : > { %v919_v45 = vsub.f32 %v2262_v37, %v881_v19  ;;  %v920_v46 = vsub.f32 %v2264_v38, %v881_v19  ;;  %v931_v41 = vsub.f32 %v784_v50, %v899_v28  ;;  %v932_v42 = vsub.f32 %v2280_v51, %v899_v28 }
 0x36f   : > { %v995_v38 = vmul.f32 1.442695, %v933_v52  ;;  %v997_v50 = vmul.f32 1.442695, %v934_v59 }
 0x370   : > { %v2318_v49 = vpop.eup %1784  ;;  %v967_v55 = vmul.f32 1.442695, %v919_v45  ;;  %v969_v56 = vmul.f32 1.442695, %v920_v46  ;;  %v991_v57 = vmul.f32 1.442695, %v931_v41 }
 0x371   : > { %v2321_v58 = vpop.eup %1786  ;;  %v993_v60 = vmul.f32 1.442695, %v932_v42 }
 0x372   : > { %1788 = vpow2.f32 %v967_v55  ;;  %v1029_v37 = vadd.f32 %v2321_v58, %v2318_v49 }
 0x373   : > { %1790 = vpow2.f32 %v969_v56 }
 0x374   : > { %1792 = vpow2.f32 %v991_v57  ;;  %1030 = vadd.xlane.f32.xlu1 %v1029_v37 }
 0x375   : > { %1794 = vpow2.f32 %v993_v60  ;;  %v875_v51 = vpop.xlane.xlu2 %874  ;;  %v890_v53 = vpop.xlane.xlu1 %889 }
 0x376   : > { %v915_v61 = vsub.f32 %v2254_v33, %v875_v51  ;;  %v916_v62 = vsub.f32 %v2256_v34, %v875_v51  ;;  %1796 = vpow2.f32 %v995_v38  ;;  %v987_v34 = vmul.f32 1.442695, %v929_v54 }
 0x377   : > { %1798 = vpow2.f32 %v997_v50  ;;  %v925_v18 = vsub.f32 %v2270_v43, %v890_v53 }
 0x378   : > { %v2328_v63 = vpop.eup %1788  ;;  %v959_v0 = vmul.f32 1.442695, %v915_v61  ;;  %v961_v1 = vmul.f32 1.442695, %v916_v62 }
 0x379   : > { %v2331_v2 = vpop.eup %1790  ;;  %v979_v46 = vmul.f32 1.442695, %v925_v18 }
 0x37a   : > { %v2334_v5 = vpop.eup %1792  ;;  %1800 = vpow2.f32 %v959_v0  ;;  %v1023_v33 = vadd.f32 %v2331_v2, %v2328_v63 }
 0x37b   : > { %v2338_v6 = vpop.eup %1794  ;;  %1802 = vpow2.f32 %v961_v1 }
 0x37c   : > { %1024 = vadd.xlane.f32.xlu1 %v1023_v33  ;;  %v1041_v47 = vadd.f32 %v2338_v6, %v2334_v5  ;;  %v2342_v10 = vpop.eup %1796  ;;  %1804 = vpow2.f32 %v987_v34 }
 0x37d   : > { %v869_v8 = vpop.xlane.xlu2 %868  ;;  %v884_v9 = vpop.xlane.xlu1 %883  ;;  %1806 = vpow2.f32 %v989_v7 }
 0x37e   : > { %1042 = vadd.xlane.f32.xlu2 %v1041_v47  ;;  %v911_v48 = vsub.f32 %v2246_v29, %v869_v8  ;;  %v912_v4 = vsub.f32 %v2248_v30, %v869_v8  ;;  %v2346_v11 = vpop.eup %1798  ;;  %v926_v29 = vsub.f32 %v2272_v44, %v890_v53  ;;  %v921_v44 = vsub.f32 %v2266_v39, %v884_v9 }
 0x37f   : > { %v1044_v30 = vadd.f32 %v2346_v11, %v2342_v10  ;;  %v922_v56 = vsub.f32 %v2268_v40, %v884_v9 }
 0x380   : > { %v2348_v12 = vpop.eup %1800  ;;  %v951_v13 = vmul.f32 1.442695, %v911_v48  ;;  %v953_v15 = vmul.f32 1.442695, %v912_v4  ;;  %v981_v42 = vmul.f32 1.442695, %v926_v29 }
 0x381   : > { %v2350_v16 = vpop.eup %1802  ;;  %v971_v60 = vmul.f32 1.442695, %v921_v44  ;;  %v973_v37 = vmul.f32 1.442695, %v922_v56 }
 0x382   : > { %1808 = vpow2.f32 %v951_v13  ;;  %v1017_v19 = vadd.f32 %v2350_v16, %v2348_v12  ;;  %v2358_v45 = vpop.eup %1804 }
 0x383   : > { %1810 = vpow2.f32 %v953_v15  ;;  %v2360_v41 = vpop.eup %1806 }
 0x384   : > { %1018 = vadd.xlane.f32.xlu1 %v1017_v19  ;;  %1812 = vpow2.f32 %v979_v46  ;;  %v1038_v57 = vadd.f32 %v2360_v41, %v2358_v45 }
 0x385   : > { %v878_v28 = vpop.xlane.xlu1 %877  ;;  %1814 = vpow2.f32 %v981_v42 }
 0x386   : > { %1045 = vadd.xlane.f32.xlu2 %v1044_v30  ;;  %v917_v50 = vsub.f32 %v2258_v35, %v878_v28  ;;  %v918_v39 = vsub.f32 %v2260_v36, %v878_v28  ;;  %1816 = vpow2.f32 %v971_v60 }
 0x387   : > { %1818 = vpow2.f32 %v973_v37 }
 0x388   : > { %v2362_v43 = vpop.eup %1808  ;;  %v963_v53 = vmul.f32 1.442695, %v917_v50  ;;  %v965_v61 = vmul.f32 1.442695, %v918_v39 }
 0x389   : > { %v2364_v52 = vpop.eup %1810 }
 0x38a   : > { %v1011_v55 = vadd.f32 %v2364_v52, %v2362_v43  ;;  %v2372_v38 = vpop.eup %1812  ;;  %1820 = vpow2.f32 %v963_v53 }
 0x38b   : > { %v2375_v51 = vpop.eup %1814  ;;  %1822 = vpow2.f32 %v965_v61 }
 0x38c   : > { %1012 = vadd.xlane.f32.xlu1 %v1011_v55  ;;  %v1032_v40 = vadd.f32 %v2375_v51, %v2372_v38  ;;  %v2382_v1 = vpop.eup %1816 }
 0x38d   : > { %v872_v59 = vpop.xlane.xlu1 %871  ;;  %v2384_v33 = vpop.eup %1818 }
 0x38e   : > { %1039 = vadd.xlane.f32.xlu2 %v1038_v57  ;;  %v913_v36 = vsub.f32 %v2250_v31, %v872_v59  ;;  %v914_v34 = vsub.f32 %v2252_v32, %v872_v59  ;;  %v1026_v47 = vadd.f32 %v2384_v33, %v2382_v1 }
 0x390   : > { %v955_v8 = vmul.f32 1.442695, %v913_v36  ;;  %v957_v48 = vmul.f32 1.442695, %v914_v34 }
 0x395   : > { %v863_v62 = vpop.xlane.xlu1 %862 }
 0x396   : > { %1033 = vadd.xlane.f32.xlu2 %v1032_v40  ;;  %v907_v54 = vsub.f32 %v2236_v24, %v863_v62  ;;  %v908_v0 = vsub.f32 %v2238_v25, %v863_v62  ;;  %v866_v24 = vpop.xlane.xlu0 %865  ;;  %v2390_v25 = vpop.eup %1820 }
 0x397   : > { %v2392_v9 = vpop.eup %1822  ;;  %v909_v31 = vsub.f32 %v2240_v26, %v866_v24  ;;  %v910_v32 = vsub.f32 %v2242_v27, %v866_v24 }
 0x398   : > { %v943_v35 = vmul.f32 1.442695, %v907_v54  ;;  %v945_v3 = vmul.f32 1.442695, %v908_v0  ;;  %v1020_v19 = vadd.f32 %v2392_v9, %v2390_v25 }
 0x399   : > { %v947_v18 = vmul.f32 1.442695, %v909_v31  ;;  %v949_v29 = vmul.f32 1.442695, %v910_v32 }
 0x39a   : > { %1824 = vpow2.f32 %v943_v35 }
 0x39b   : > { %1826 = vpow2.f32 %v945_v3 }
 0x39c   : > { %1828 = vpow2.f32 %v955_v8 }
 0x39d   : > { %v860_v7 = vpop.xlane.xlu1 %859  ;;  %1830 = vpow2.f32 %v957_v48 }
 0x39e   : > { %1027 = vadd.xlane.f32.xlu2 %v1026_v47  ;;  %1832 = vpow2.f32 %v947_v18  ;;  %v905_v55 = vsub.f32 %v2232_v22, %v860_v7  ;;  %v906_v56 = vsub.f32 %v2234_v23, %v860_v7 }
 0x39f   : > { %1834 = vpow2.f32 %v949_v29 }
 0x3a0   : > { %v2394_v4 = vpop.eup %1824  ;;  %v941_v60 = vmul.f32 1.442695, %v906_v56 }
 0x3a1   : > { %v2397_v13 = vpop.eup %1826 }
 0x3a2   : > { %v1005_v15 = vadd.f32 %v2397_v13, %v2394_v4  ;;  %v2406_v46 = vpop.eup %1828 }
 0x3a3   : > { %v2408_v44 = vpop.eup %1830 }
 0x3a4   : > { %1006 = vadd.xlane.f32.xlu1 %v1005_v15  ;;  %v1014_v57 = vadd.f32 %v2408_v44, %v2406_v46 }
 0x3a5   : > { %v857_v30 = vpop.xlane.xlu1 %856 }
 0x3a6   : > { %1021 = vadd.xlane.f32.xlu2 %v1020_v19  ;;  %v903_v28 = vsub.f32 %v2228_v20, %v857_v30  ;;  %v904_v26 = vsub.f32 %v2230_v21, %v857_v30  ;;  %v2414_v20 = vpop.eup %1832  ;;  %v939_v21 = vmul.f32 1.442695, %v905_v55 }
 0x3a7   : > { %v2416_v59 = vpop.eup %1834 }
 0x3a8   : > { %v935_v27 = vmul.f32 1.442695, %v903_v28  ;;  %v937_v42 = vmul.f32 1.442695, %v904_v26  ;;  %v1008_v23 = vadd.f32 %v2416_v59, %v2414_v20 }
 0x3aa   : > { %1836 = vpow2.f32 %v935_v27 }
 0x3ab   : > { %1838 = vpow2.f32 %v937_v42 }
 0x3ac   : > { %1840 = vpow2.f32 %v939_v21 }
 0x3ad   : > { %1842 = vpow2.f32 %v941_v60 }
 0x3ae   : > { %1015 = vadd.xlane.f32.xlu2 %v1014_v57 }
 0x3b0   : > { %v2418_v37 = vpop.eup %1836 }
 0x3b1   : > { %v2420_v50 = vpop.eup %1838 }
 0x3b2   : > { %v999_v22 = vadd.f32 %v2420_v50, %v2418_v37  ;;  %v2426_v39 = vpop.eup %1840 }
 0x3b3   : > { %v2428_v53 = vpop.eup %1842 }
 0x3b4   : > { %1000 = vadd.xlane.f32.xlu1 %v999_v22  ;;  %v1002_v40 = vadd.f32 %v2428_v53, %v2426_v39 }
 0x3b6   : > { %1009 = vadd.xlane.f32.xlu2 %v1008_v23 }
 0x3be   : > { %1003 = vadd.xlane.f32.xlu2 %v1002_v40 }
 0x3df   : > { %v1037_v61 = vpop.xlane.xlu1 %1036 }
 0x3e0   : > { %1844 = vrcp.f32 %v1037_v61  ;;  %v1250_v3 = vand.u32 2147483648, %v1037_v61  ;;  %v1248_v34 = vand.u32 2147483647, %v1037_v61  ;;  %vm1244_vm6 = vweird.f32 %v1037_v61 }
 0x3e2   : > { %v1251_v7 = vor.u32 1.1754944e-38, %v1250_v3  ;;  %vm1249_vm8 = vcmp.eq.f32.partialorder %v1248_v34, 8.507059e+37 }
 0x3e6   : > { %v1845_v62 = vpop.eup %1844 }
 0x3e7   : > { %v1240_v54 = vmul.f32 %v1845_v62, %v1037_v61  ;;  %v1031_v0 = vpop.xlane.xlu1 %1030  ;;  %vm1245_vm5 = vweird.f32 %v1845_v62 }
 0x3e8   : > { %1846 = vrcp.f32 %v1031_v0  ;;  %vm1246_vm7 = vmor %vm1244_vm6, %vm1245_vm5  ;;  %v1218_v30 = vand.u32 2147483648, %v1031_v0  ;;  %v1216_v26 = vand.u32 2147483647, %v1031_v0  ;;  %vm1212_vm10 = vweird.f32 %v1031_v0 }
 0x3e9   : > { %v1241_v35 = vsub.f32 1.0, %v1240_v54 }
 0x3ea   : > { %v1219_v55 = vor.u32 1.1754944e-38, %v1218_v30  ;;  %vm1217_vm12 = vcmp.eq.f32.partialorder %v1216_v26, 8.507059e+37 }
 0x3eb   : > { %v1242_v36 = vmul.f32 %v1845_v62, %v1241_v35 }
 0x3ed   : > { %v1243_v47 = vadd.f32 %v1845_v62, %v1242_v36 }
 0x3ee   : > { %v1847_v24 = vpop.eup %1846 }
 0x3ef   : > { %v1208_v8 = vmul.f32 %v1847_v24, %v1031_v0  ;;  %v1025_v48 = vpop.xlane.xlu1 %1024  ;;  %v1247_v31 = vsel %vm1246_vm7, %v1845_v62, %v1243_v47  ;;  %vm1213_vm9 = vweird.f32 %v1847_v24 }
 0x3f0   : > { %1848 = vrcp.f32 %v1025_v48  ;;  %v1252_v32 = vsel %vm1249_vm8, %v1251_v7, %v1247_v31  ;;  %vm1214_vm11 = vmor %vm1212_vm10, %vm1213_vm9  ;;  %v1184_v61 = vand.u32 2147483647, %v1025_v48  ;;  %v1186_v62 = vand.u32 2147483648, %v1025_v48 }
 0x3f1   : > { %v1209_v15 = vsub.f32 1.0, %v1208_v8  ;;  %v1043_v18 = vpop.xlane.xlu2 %1042  ;;  %v2433_v19 = vmul.f32 %v2309_v14, %v1252_v32  ;;  %v2436_v29 = vmul.f32 %v2311_v17, %v1252_v32  ;;  %vm1180_vm15 = vweird.f32 %v1025_v48 }
 0x3f2   : > { %1850 = vrcp.f32 %v1043_v18  ;;  %v1280_v3 = vand.u32 2147483647, %v1043_v18  ;;  %v1282_v36 = vand.u32 2147483648, %v1043_v18  ;;  %vm1276_vm0 = vweird.f32 %v1043_v18 }
 0x3f3   : > { %v1210_v28 = vmul.f32 %v1847_v24, %v1209_v15  ;;  %1327 = vst [vmem:[%s2124_s12 + $0xc0] sm:$0xff] %v2433_v19  ;;  %vm2462_vm2 = vcmp.eq.f32.partialorder %v1184_v61, 8.507059e+37  ;;  %v1187_v15 = vor.u32 1.1754944e-38, %v1186_v62 }
 0x3f4   : > { %1328 = vst [vmem:[%s2124_s12 + $0xc8] sm:$0xff] %v2436_v29  ;;  %vm1281_vm4 = vcmp.eq.f32.partialorder %v1280_v3, 8.507059e+37 }
 0x3f5   : > { %v1211_v27 = vadd.f32 %v1847_v24, %v1210_v28 }
 0x3f6   : > { %v1849_v42 = vpop.eup %1848 }
 0x3f7   : > { %v1176_v56 = vmul.f32 %v1849_v42, %v1025_v48  ;;  %v2442_v14 = vpop.xlane.xlu1 %1018  ;;  %v1215_v17 = vsel %vm1214_vm11, %v1847_v24, %v1211_v27  ;;  %vm1181_vm13 = vweird.f32 %v1849_v42 }
 0x3f8   : > { %v1851_v57 = vpop.eup %1850  ;;  %1852 = vrcp.f32 %v2442_v14  ;;  %v1220_v21 = vsel %vm1217_vm12, %v1219_v55, %v1215_v17  ;;  %vm2458_vm1 = vmor %vm1180_vm15, %vm1181_vm13  ;;  %v1152_v30 = vand.u32 2147483647, %v2442_v14  ;;  %v1154_v17 = vand.u32 2147483648, %v2442_v14 }
 0x3f9   : > { %v1272_v60 = vmul.f32 %v1851_v57, %v1043_v18  ;;  %v1177_v22 = vsub.f32 1.0, %v1176_v56  ;;  %v2445_v23 = vpop.xlane.xlu2 %1045  ;;  %v2448_v40 = vmul.f32 %v2318_v49, %v1220_v21  ;;  %v2454_v35 = vmul.f32 %v2321_v58, %v1220_v21 }
 0x3fa   : > { %1854 = vrcp.f32 %v2445_v23  ;;  %vm1277_vm14 = vweird.f32 %v1851_v57  ;;  %v1283_v18 = vor.u32 1.1754944e-38, %v1282_v36  ;;  %v1298_v62 = vand.u32 2147483648, %v2445_v23 }
 0x3fb   : > { %v1273_v54 = vsub.f32 1.0, %v1272_v60  ;;  %v1178_v0 = vmul.f32 %v1849_v42, %v1177_v22  ;;  %1323 = vst [vmem:[%s2124_s12 + $0xa0] sm:$0xff] %v2448_v40  ;;  %vm1278_vm3 = vmor %vm1276_vm0, %vm1277_vm14  ;;  %vm1148_vm7 = vweird.f32 %v2442_v14  ;;  %vm1292_vm8 = vweird.f32 %v2445_v23 }
 0x3fc   : > { %1324 = vst [vmem:[%s2124_s12 + $0xa8] sm:$0xff] %v2454_v35  ;;  %vm1153_vm12 = vcmp.eq.f32.partialorder %v1152_v30, 8.507059e+37 }
 0x3fd   : > { %v1274_v34 = vmul.f32 %v1851_v57, %v1273_v54  ;;  %v1179_v49 = vadd.f32 %v1849_v42, %v1178_v0 }
 0x3fe   : > { %v1853_v47 = vpop.eup %1852 }
 0x3ff   : > { %v1144_v58 = vmul.f32 %v1853_v47, %v2442_v14  ;;  %v2467_v8 = vpop.xlane.xlu1 %1012  ;;  %v1275_v31 = vadd.f32 %v1851_v57, %v1274_v34  ;;  %v1183_v32 = vsel %vm2458_vm1, %v1849_v42, %v1179_v49  ;;  %vm1149_vm5 = vweird.f32 %v1853_v47 }
 0x400   : > { %v1855_v48 = vpop.eup %1854  ;;  %1856 = vrcp.f32 %v2467_v8  ;;  %v1188_v42 = vsel %vm2462_vm2, %v1187_v15, %v1183_v32  ;;  %vm2502_vm9 = vmor %vm1148_vm7, %vm1149_vm5  ;;  %v1155_v49 = vor.u32 1.1754944e-38, %v1154_v17  ;;  %v1120_v24 = vand.u32 2147483647, %v2467_v8 }
 0x401   : > { %v1288_v28 = vmul.f32 %v1855_v48, %v2445_v23  ;;  %v1145_v26 = vsub.f32 1.0, %v1144_v58  ;;  %v2475_v27 = vpop.xlane.xlu2 %1039  ;;  %v1279_v55 = vsel %vm1278_vm3, %v1851_v57, %v1275_v31  ;;  %v1296_v57 = vand.u32 2147483647, %v2445_v23 }
 0x402   : > { %1858 = vrcp.f32 %v2475_v27  ;;  %v1284_v56 = vsel %vm1281_vm4, %v1283_v18, %v1279_v55  ;;  %v2490_v54 = vmul.f32 %v2328_v63, %v1188_v42  ;;  %v2493_v0 = vmul.f32 %v2331_v2, %v1188_v42 }
 0x403   : > { %v1289_v21 = vsub.f32 1.0, %v1288_v28  ;;  %v1146_v60 = vmul.f32 %v1853_v47, %v1145_v26  ;;  %v2482_v22 = vmul.f32 %v2334_v5, %v1284_v56  ;;  %v2485_v61 = vmul.f32 %v2338_v6, %v1284_v56 }
 0x404   : > { %vm1293_vm6 = vweird.f32 %v1855_v48  ;;  %1319 = vst [vmem:[%s2124_s12 + $0x80] sm:$0xff] %v2490_v54  ;;  %vm1297_vm11 = vcmp.eq.f32.partialorder %v1296_v57, 8.507059e+37  ;;  %v1299_v23 = vor.u32 1.1754944e-38, %v1298_v62  ;;  %v1122_v18 = vand.u32 2147483648, %v2467_v8 }
 0x405   : > { %v1290_v3 = vmul.f32 %v1855_v48, %v1289_v21  ;;  %1331 = vst [vmem:[%s2124_s12 + $0xe0] sm:$0xff] %v2482_v22  ;;  %v1147_v5 = vadd.f32 %v1853_v47, %v1146_v60  ;;  %vm1294_vm10 = vmor %vm1292_vm8, %vm1293_vm6  ;;  %v1266_v42 = vand.u32 2147483648, %v2475_v27  ;;  %vm1116_vm14 = vweird.f32 %v2467_v8 }
 0x406   : > { %v1857_v6 = vpop.eup %1856  ;;  %1332 = vst [vmem:[%s2124_s12 + $0xe8] sm:$0xff] %v2485_v61  ;;  %v1123_v21 = vor.u32 1.1754944e-38, %v1122_v18  ;;  %vm1260_vm1 = vweird.f32 %v2475_v27  ;;  %vm1121_vm2 = vcmp.eq.f32.partialorder %v1120_v24, 8.507059e+37 }
 0x407   : > { %v1112_v2 = vmul.f32 %v1857_v6, %v2467_v8  ;;  %v1291_v36 = vadd.f32 %v1855_v48, %v1290_v3  ;;  %v1151_v34 = vsel %vm2502_vm9, %v1853_v47, %v1147_v5  ;;  %1320 = vst [vmem:[%s2124_s12 + $0x88] sm:$0xff] %v2493_v0  ;;  %vm1117_vm13 = vweird.f32 %v1857_v6 }
 0x408   : > { %v1859_v14 = vpop.eup %1858  ;;  %v1156_v15 = vsel %vm1153_vm12, %v1155_v49, %v1151_v34  ;;  %vm1118_vm0 = vmor %vm1116_vm14, %vm1117_vm13  ;;  %v1267_v60 = vor.u32 1.1754944e-38, %v1266_v42 }
 0x409   : > { %v1256_v7 = vmul.f32 %v1859_v14, %v2475_v27  ;;  %v1113_v58 = vsub.f32 1.0, %v1112_v2  ;;  %v2515_v31 = vpop.xlane.xlu2 %1033  ;;  %v1295_v32 = vsel %vm1294_vm10, %v1855_v48, %v1291_v36  ;;  %v2523_v56 = vmul.f32 %v2348_v12, %v1156_v15 }
 0x40a   : > { %1860 = vrcp.f32 %v2515_v31  ;;  %v1300_v47 = vsel %vm1297_vm11, %v1299_v23, %v1295_v32  ;;  %v2526_v48 = vmul.f32 %v2350_v16, %v1156_v15  ;;  %vm1261_vm15 = vweird.f32 %v1859_v14 }
 0x40b   : > { %v1257_v28 = vsub.f32 1.0, %v1256_v7  ;;  %v1114_v26 = vmul.f32 %v1857_v6, %v1113_v58  ;;  %v1301_v30 = vmul.f32 %v2342_v10, %v1300_v47  ;;  %v1302_v55 = vmul.f32 %v2346_v11, %v1300_v47  ;;  %1315 = vst [vmem:[%s2124_s12 + $0x60] sm:$0xff] %v2523_v56  ;;  %vm1262_vm3 = vmor %vm1260_vm1, %vm1261_vm15 }
 0x40c   : > { %v1264_v10 = vand.u32 2147483647, %v2475_v27  ;;  %1316 = vst [vmem:[%s2124_s12 + $0x68] sm:$0xff] %v2526_v48  ;;  %vm1228_vm6 = vweird.f32 %v2515_v31 }
 0x40d   : > { %v1258_v17 = vmul.f32 %v1859_v14, %v1257_v28  ;;  %1333 = vst [vmem:[%s2124_s12 + $0xf0] sm:$0xff] %v1301_v30  ;;  %1343 = vmatpush.xpose.msra.mxu3 %v1301_v30  ;;  %1372 = vmatpush.xpose.msrb.mxu0 %v1302_v55  ;;  %v1115_v11 = vadd.f32 %v1857_v6, %v1114_v26 }
 0x40e   : > { %1334 = vst [vmem:[%s2124_s12 + $0xf8] sm:$0xff] %v1302_v55  ;;  %vm1265_vm4 = vcmp.eq.f32.partialorder %v1264_v10, 8.507059e+37 }
 0x40f   : > { %v1259_v12 = vadd.f32 %v1859_v14, %v1258_v17  ;;  %v1119_v16 = vsel %vm1118_vm0, %v1857_v6, %v1115_v11 }
 0x410   : > { %v1861_v8 = vpop.eup %1860  ;;  %v1124_v57 = vsel %vm1121_vm2, %v1123_v21, %v1119_v16 }
 0x411   : > { %v1224_v62 = vmul.f32 %v1861_v8, %v2515_v31  ;;  %1344 = vmatpush.xpose.msra.mxu3 %v2482_v22  ;;  %1373 = vmatpush.xpose.msrb.mxu0 %v2485_v61  ;;  %v1028_v3 = vpop.xlane.xlu2 %1027  ;;  %v1263_v27 = vsel %vm1262_vm3, %v1859_v14, %v1259_v12  ;;  %v2542_v5 = vmul.f32 %v2362_v43, %v1124_v57  ;;  %v1234_v22 = vand.u32 2147483648, %v2515_v31 }
 0x412   : > { %1862 = vrcp.f32 %v1028_v3  ;;  %v1268_v6 = vsel %vm1265_vm4, %v1267_v60, %v1263_v27  ;;  %v2550_v61 = vmul.f32 %v2364_v52, %v1124_v57  ;;  %vm1229_vm5 = vweird.f32 %v1861_v8 }
 0x413   : > { %v1225_v63 = vsub.f32 1.0, %v1224_v62  ;;  %v1269_v2 = vmul.f32 %v2358_v45, %v1268_v6  ;;  %v1270_v36 = vmul.f32 %v2360_v41, %v1268_v6  ;;  %1311 = vst [vmem:[%s2124_s12 + $0x40] sm:$0xff] %v2542_v5  ;;  %v1232_v43 = vand.u32 2147483647, %v2515_v31  ;;  %vm1230_vm7 = vmor %vm1228_vm6, %vm1229_vm5 }
 0x414   : > { %1312 = vst [vmem:[%s2124_s12 + $0x48] sm:$0xff] %v2550_v61  ;;  %v1235_v52 = vor.u32 1.1754944e-38, %v1234_v22  ;;  %v1200_v15 = vand.u32 2147483647, %v1028_v3  ;;  %v1202_v47 = vand.u32 2147483648, %v1028_v3  ;;  %vm1196_vm10 = vweird.f32 %v1028_v3 }
 0x415   : > { %v1226_v34 = vmul.f32 %v1861_v8, %v1225_v63  ;;  %1329 = vst [vmem:[%s2124_s12 + $0xd0] sm:$0xff] %v1269_v2  ;;  %1345 = vmatpush.xpose.msra.mxu3 %v1269_v2  ;;  %1374 = vmatpush.xpose.msrb.mxu0 %v1270_v36  ;;  %vm1233_vm8 = vcmp.eq.f32.partialorder %v1232_v43, 8.507059e+37 }
 0x416   : > { %1330 = vst [vmem:[%s2124_s12 + $0xd8] sm:$0xff] %v1270_v36  ;;  %vm1201_vm12 = vcmp.eq.f32.partialorder %v1200_v15, 8.507059e+37  ;;  %v1203_v30 = vor.u32 1.1754944e-38, %v1202_v47 }
 0x417   : > { %v2555_v49 = vpop.xlane.xlu1 %1006  ;;  %v1227_v45 = vadd.f32 %v1861_v8, %v1226_v34 }
 0x418   : > { %v1863_v41 = vpop.eup %1862  ;;  %1864 = vrcp.f32 %v2555_v49  ;;  %v1088_v17 = vand.u32 2147483647, %v2555_v49  ;;  %v1090_v11 = vand.u32 2147483648, %v2555_v49  ;;  %vm1084_vm14 = vweird.f32 %v2555_v49 }
 0x419   : > { %v1192_v14 = vmul.f32 %v1863_v41, %v1028_v3  ;;  %v2561_v23 = vpop.xlane.xlu2 %1021  ;;  %1346 = vmatpush.xpose.msra.mxu3 %v2433_v19  ;;  %1375 = vmatpush.xpose.msrb.mxu0 %v2436_v29  ;;  %v1231_v24 = vsel %vm1230_vm7, %v1861_v8, %v1227_v45  ;;  %vm1197_vm9 = vweird.f32 %v1863_v41 }
 0x41a   : > { %1866 = vrcp.f32 %v2561_v23  ;;  %v1236_v7 = vsel %vm1233_vm8, %v1235_v52, %v1231_v24  ;;  %vm1198_vm11 = vmor %vm1196_vm10, %vm1197_vm9  ;;  %v1168_v60 = vand.u32 2147483647, %v2561_v23  ;;  %v1091_v62 = vor.u32 1.1754944e-38, %v1090_v11 }
 0x41b   : > { %v1193_v58 = vsub.f32 1.0, %v1192_v14  ;;  %v1237_v31 = vmul.f32 %v2372_v38, %v1236_v7  ;;  %v1238_v32 = vmul.f32 %v2375_v51, %v1236_v7  ;;  %vm1164_vm1 = vweird.f32 %v2561_v23 }
 0x41c   : > { %vm1089_vm2 = vcmp.eq.f32.partialorder %v1088_v17, 8.507059e+37  ;;  %vm1169_vm4 = vcmp.eq.f32.partialorder %v1168_v60, 8.507059e+37 }
 0x41d   : > { %v1194_v18 = vmul.f32 %v1863_v41, %v1193_v58  ;;  %1325 = vst [vmem:[%s2124_s12 + $0xb0] sm:$0xff] %v1237_v31  ;;  %1347 = vmatpush.xpose.msra.mxu3 %v1237_v31  ;;  %1376 = vmatpush.xpose.msrb.mxu0 %v1238_v32 }
 0x41e   : > { %v1865_v19 = vpop.eup %1864  ;;  %1326 = vst [vmem:[%s2124_s12 + $0xb8] sm:$0xff] %v1238_v32 }
 0x41f   : > { %v1080_v29 = vmul.f32 %v1865_v19, %v2555_v49  ;;  %v1195_v28 = vadd.f32 %v1863_v41, %v1194_v18  ;;  %vm1085_vm13 = vweird.f32 %v1865_v19 }
 0x420   : > { %v1867_v26 = vpop.eup %1866  ;;  %vm1086_vm0 = vmor %vm1084_vm14, %vm1085_vm13 }
 0x421   : > { %v1160_v38 = vmul.f32 %v1867_v26, %v2561_v23  ;;  %v1081_v51 = vsub.f32 1.0, %v1080_v29  ;;  %v2572_v55 = vpop.xlane.xlu2 %1015  ;;  %1348 = vmatpush.xpose.msra.mxu3 %v2448_v40  ;;  %1377 = vmatpush.xpose.msrb.mxu0 %v2454_v35  ;;  %v1199_v42 = vsel %vm1198_vm11, %v1863_v41, %v1195_v28  ;;  %v1170_v40 = vand.u32 2147483648, %v2561_v23 }
 0x422   : > { %1868 = vrcp.f32 %v2572_v55  ;;  %v1204_v10 = vsel %vm1201_vm12, %v1203_v30, %v1199_v42  ;;  %vm1165_vm15 = vweird.f32 %v1867_v26  ;;  %v1138_v41 = vand.u32 2147483648, %v2572_v55 }
 0x423   : > { %v1161_v21 = vsub.f32 1.0, %v1160_v38  ;;  %v1082_v12 = vmul.f32 %v1865_v19, %v1081_v51  ;;  %v1205_v16 = vmul.f32 %v2382_v1, %v1204_v10  ;;  %v1206_v8 = vmul.f32 %v2384_v33, %v1204_v10  ;;  %vm1166_vm3 = vmor %vm1164_vm1, %vm1165_vm15 }
 0x424   : > { %v1171_v6 = vor.u32 1.1754944e-38, %v1170_v40  ;;  %vm1132_vm6 = vweird.f32 %v2572_v55  ;;  %v1139_v24 = vor.u32 1.1754944e-38, %v1138_v41 }
 0x425   : > { %v1162_v35 = vmul.f32 %v1867_v26, %v1161_v21  ;;  %1321 = vst [vmem:[%s2124_s12 + $0x90] sm:$0xff] %v1205_v16  ;;  %1349 = vmatpush.xpose.msra.mxu3 %v1205_v16  ;;  %1378 = vmatpush.xpose.msrb.mxu0 %v1206_v8  ;;  %v1083_v57 = vadd.f32 %v1865_v19, %v1082_v12 }
 0x426   : > { %1322 = vst [vmem:[%s2124_s12 + $0x98] sm:$0xff] %v1206_v8 }
 0x427   : > { %v2587_v3 = vpop.xlane.xlu1 %1000  ;;  %v1163_v1 = vadd.f32 %v1867_v26, %v1162_v35  ;;  %v1087_v33 = vsel %vm1086_vm0, %v1865_v19, %v1083_v57 }
 0x428   : > { %v1869_v27 = vpop.eup %1868  ;;  %1870 = vrcp.f32 %v2587_v3  ;;  %v1092_v63 = vsel %vm1089_vm2, %v1091_v62, %v1087_v33  ;;  %v1058_v7 = vand.u32 2147483648, %v2587_v3  ;;  %v1056_v47 = vand.u32 2147483647, %v2587_v3  ;;  %v1779_v62 = vld [vmem:[#allocation4] ss:$0 sm:$0xff]  ;;  %v1337_v33 = vld [vmem:[#allocation3 + $0x18] sm:$0xff] }
 0x429   : > { %v1128_v2 = vmul.f32 %v1869_v27, %v2572_v55  ;;  %1350 = vmatpush.xpose.msra.mxu3 %v2490_v54  ;;  %1379 = vmatpush.xpose.msrb.mxu0 %v2493_v0  ;;  %v2594_v36 = vpop.xlane.xlu2 %1009  ;;  %v1167_v22 = vsel %vm1166_vm3, %v1867_v26, %v1163_v1  ;;  %v2597_v34 = vmul.f32 %v2394_v4, %v1092_v63  ;;  %v1136_v0 = vand.u32 2147483647, %v2572_v55  ;;  %v1336_v1 = vld [vmem:[#allocation3] sm:$0xff] }
 0x42a   : > { %1872 = vrcp.f32 %v2594_v36  ;;  %v1172_v43 = vsel %vm1169_vm4, %v1171_v6, %v1167_v22  ;;  %v2607_v52 = vmul.f32 %v2397_v13, %v1092_v63  ;;  %vm1133_vm5 = vweird.f32 %v1869_v27  ;;  %1405 = vperm.xlu2 %1778, %v1779_v62   ;;  %v1341_v6 = vld [vmem:[#allocation3 + $0x28] sm:$0xff]  ;;  %v1342_v63 = vld [vmem:[#allocation3 + $0x38] sm:$0xff] }
 0x42b   : > { %v1129_v49 = vsub.f32 1.0, %v1128_v2  ;;  %v1173_v45 = vmul.f32 %v2390_v25, %v1172_v43  ;;  %v1174_v54 = vmul.f32 %v2392_v9, %v1172_v43  ;;  %1307 = vst [vmem:[%s2124_s12 + $0x20] sm:$0xff] %v2597_v34  ;;  %vm1134_vm7 = vmor %vm1132_vm6, %vm1133_vm5  ;;  %vm1137_vm8 = vcmp.eq.f32.partialorder %v1136_v0, 8.507059e+37  ;;  %v599_v43 = vld [vmem:[%s598_s26] sm:$0xff] }
 0x42c   : > { %1308 = vst [vmem:[%s2124_s12 + $0x28] sm:$0xff] %v2607_v52  ;;  %vm1052_vm10 = vweird.f32 %v2587_v3  ;;  %v1059_v38 = vor.u32 1.1754944e-38, %v1058_v7  ;;  %vm1100_vm13 = vweird.f32 %v2594_v36  ;;  %vm1057_vm14 = vcmp.eq.f32.partialorder %v1056_v47, 8.507059e+37 }
 0x42d   : > { %v1130_v4 = vmul.f32 %v1869_v27, %v1129_v49  ;;  %1317 = vst [vmem:[%s2124_s12 + $0x70] sm:$0xff] %v1173_v45  ;;  %1351 = vmatpush.xpose.msra.mxu3 %v1173_v45  ;;  %1380 = vmatpush.xpose.msrb.mxu0 %v1174_v54 }
 0x42e   : > { %v1871_v14 = vpop.eup %1870  ;;  %1318 = vst [vmem:[%s2124_s12 + $0x78] sm:$0xff] %v1174_v54 }
 0x42f   : > { %v1048_v25 = vmul.f32 %v1871_v14, %v2587_v3  ;;  %v1131_v23 = vadd.f32 %v1869_v27, %v1130_v4  ;;  %vm1053_vm9 = vweird.f32 %v1871_v14  ;;  %v1335_v3 = vld [vmem:[#allocation3 + $0x30] sm:$0xff] }
 0x430   : > { %v1873_v9 = vpop.eup %1872  ;;  %vm1054_vm12 = vmor %vm1052_vm10, %vm1053_vm9 }
 0x431   : > { %v1049_v13 = vsub.f32 1.0, %v1048_v25  ;;  %v1096_v58 = vmul.f32 %v1873_v9, %v2594_v36  ;;  %1352 = vmatpush.xpose.msra.mxu3 %v2523_v56  ;;  %1381 = vmatpush.xpose.msrb.mxu0 %v2526_v48  ;;  %v1004_v31 = vpop.xlane.xlu2 %1003  ;;  %v1135_v32 = vsel %vm1134_vm7, %v1869_v27, %v1131_v23  ;;  %v1106_v56 = vand.u32 2147483648, %v2594_v36  ;;  %v1338_v27 = vld [vmem:[#allocation3 + $0x10] sm:$0xff] }
 0x432   : > { %1874 = vrcp.f32 %v1004_v31  ;;  %v1140_v15 = vsel %vm1137_vm8, %v1139_v24, %v1135_v32  ;;  %vm1101_vm11 = vweird.f32 %v1873_v9  ;;  %v1104_v48 = vand.u32 2147483647, %v2594_v36  ;;  %v601_v24 = vld [vmem:[%s598_s26 + $0x20] sm:$0xff] }
 0x433   : > { %v1050_v18 = vmul.f32 %v1871_v14, %v1049_v13  ;;  %v1097_v19 = vsub.f32 1.0, %v1096_v58  ;;  %v1141_v29 = vmul.f32 %v2406_v46, %v1140_v15  ;;  %v1142_v28 = vmul.f32 %v2408_v44, %v1140_v15  ;;  %vm1102_vm15 = vmor %vm1100_vm13, %vm1101_vm11  ;;  %v602_v15 = vld [vmem:[%s598_s26 + $0x30] sm:$0xff] }
 0x434   : > { %v1107_v55 = vor.u32 1.1754944e-38, %v1106_v56  ;;  %vm1105_vm0 = vcmp.eq.f32.partialorder %v1104_v48, 8.507059e+37  ;;  %v1074_v35 = vand.u32 2147483648, %v1004_v31  ;;  %vm1068_vm2 = vweird.f32 %v1004_v31 }
 0x435   : > { %v1098_v26 = vmul.f32 %v1873_v9, %v1097_v19  ;;  %1313 = vst [vmem:[%s2124_s12 + $0x50] sm:$0xff] %v1141_v29  ;;  %1353 = vmatpush.xpose.msra.mxu3 %v1141_v29  ;;  %1382 = vmatpush.xpose.msrb.mxu0 %v1142_v28  ;;  %v1051_v30 = vadd.f32 %v1871_v14, %v1050_v18 }
 0x436   : > { %1314 = vst [vmem:[%s2124_s12 + $0x58] sm:$0xff] %v1142_v28 }
 0x437   : > { %v1099_v51 = vadd.f32 %v1873_v9, %v1098_v26  ;;  %v1055_v46 = vsel %vm1054_vm12, %v1871_v14, %v1051_v30 }
 0x438   : > { %v1875_v44 = vpop.eup %1874  ;;  %v1060_v42 = vsel %vm1057_vm14, %v1059_v38, %v1055_v46 }
 0x439   : > { %v1064_v17 = vmul.f32 %v1875_v44, %v1004_v31  ;;  %1354 = vmatpush.xpose.msra.mxu3 %v2542_v5  ;;  %1383 = vmatpush.xpose.msrb.mxu0 %v2550_v61  ;;  %v1103_v10 = vsel %vm1102_vm15, %v1873_v9, %v1099_v51  ;;  %v1061_v11 = vmul.f32 %v2418_v37, %v1060_v42  ;;  %vm1069_vm1 = vweird.f32 %v1875_v44 }
 0x43a   : > { %v1108_v21 = vsel %vm1105_vm0, %v1107_v55, %v1103_v10  ;;  %v1062_v12 = vmul.f32 %v2420_v50, %v1060_v42  ;;  %v1072_v5 = vand.u32 2147483647, %v1004_v31  ;;  %vm1070_vm3 = vmor %vm1068_vm2, %vm1069_vm1  ;;  %v1075_v50 = vor.u32 1.1754944e-38, %v1074_v35 }
 0x43b   : > { %v1065_v16 = vsub.f32 1.0, %v1064_v17  ;;  %v1109_v8 = vmul.f32 %v2414_v20, %v1108_v21  ;;  %v1110_v40 = vmul.f32 %v2416_v59, %v1108_v21  ;;  %1303 = vst [vmem:[%s2124_s12] sm:$0xff] %v1061_v11 }
 0x43c   : > { %1304 = vst [vmem:[%s2124_s12 + $0x8] sm:$0xff] %v1062_v12  ;;  %vm1073_vm4 = vcmp.eq.f32.partialorder %v1072_v5, 8.507059e+37 }
 0x43d   : > { %v1066_v60 = vmul.f32 %v1875_v44, %v1065_v16  ;;  %1309 = vst [vmem:[%s2124_s12 + $0x30] sm:$0xff] %v1109_v8  ;;  %1355 = vmatpush.xpose.msra.mxu3 %v1109_v8  ;;  %1384 = vmatpush.xpose.msrb.mxu0 %v1110_v40 }
 0x43e   : > { %1310 = vst [vmem:[%s2124_s12 + $0x38] sm:$0xff] %v1110_v40 }
 0x43f   : > { %v1067_v37 = vadd.f32 %v1875_v44, %v1066_v60 }
 0x441   : > { %1356 = vmatpush.xpose.msra.mxu3 %v2597_v34  ;;  %1385 = vmatpush.xpose.msrb.mxu0 %v2607_v52  ;;  %v1071_v20 = vsel %vm1070_vm3, %v1875_v44, %v1067_v37  ;;  %v600_v52 = vld [vmem:[%s598_s26 + $0x10] sm:$0xff] }
 0x442   : > { %v1076_v59 = vsel %vm1073_vm4, %v1075_v50, %v1071_v20 }
 0x443   : > { %v1077_v61 = vmul.f32 %v2426_v39, %v1076_v59  ;;  %v1078_v57 = vmul.f32 %v2428_v53, %v1076_v59  ;;  %v1339_v39 = vld [vmem:[#allocation3 + $0x8] sm:$0xff]  ;;  %v1340_v53 = vld [vmem:[#allocation3 + $0x20] sm:$0xff] }
 0x445   : > { %1305 = vst [vmem:[%s2124_s12 + $0x10] sm:$0xff] %v1077_v61  ;;  %1357 = vmatpush.xpose.msra.mxu3 %v1077_v61  ;;  %1386 = vmatpush.xpose.msrb.mxu0 %v1078_v57 }
 0x446   : > { %1306 = vst [vmem:[%s2124_s12 + $0x18] sm:$0xff] %v1078_v57 }
 0x449   : > { %1358 = vmatpush.xpose.msra.mxu3 %v1061_v11  ;;  %1387 = vmatpush.xpose.msrb.mxu0 %v1062_v12 }
 0x44c   : > { %1359 = vmatmul.f32.vlgmr.msra.gmra.mxu3 %v1335_v3  ;;  %1388 = vmatmul.f32.vlgmr.msrb.gmra.mxu0 %v1336_v1 }
 0x454   : > { %1362 = vmatmul.f32.gmra.mxu3 %v1337_v33  ;;  %1391 = vmatmul.f32.gmra.mxu0 %v1338_v27 }
 0x45c   : > { %1365 = vmatmul.f32.gmra.mxu3 %v1339_v39  ;;  %1394 = vmatmul.f32.gmra.mxu0 %v1340_v53 }
 0x464   : > { %1368 = vmatmul.f32.gmra.mxu3 %v1341_v6  ;;  %1397 = vmatmul.f32.gmra.mxu0 %v1342_v63 }
 0x484   : > { %v1406_v22 = vpop.permute.xlu2 %1405 }
 0x4c9   : > { %v1389_v2 = vpop.f32.mrf.mxu0 }
 0x4cf   : > { %v1360_v36 = vpop.f32.mrf.mxu3 }
 0x4d0   : > { %v1390_v34 = vadd.f32 %v1389_v2, %v1360_v36 }
 0x4d1   : > { %v1392_v49 = vpop.f32.mrf.mxu0 }
 0x4d2   : > { %v1408_v45 = vmul.f32 %v1406_v22, %v1390_v34 }
 0x4d4   : > { %v1412_v54 = vadd.f32 %v1408_v45, %v599_v43 }
 0x4d6   : > { %1416 = vst [vmem:[%s2122_s20] sm:$0xff] %v1412_v54 }
 0x4d7   : > { %v1363_v0 = vpop.f32.mrf.mxu3 }
 0x4d8   : > { %v1393_v41 = vadd.f32 %v1392_v49, %v1363_v0 }
 0x4d9   : > { %v1395_v14 = vpop.f32.mrf.mxu0 }
 0x4da   : > { %v1409_v4 = vmul.f32 %v1406_v22, %v1393_v41 }
 0x4dc   : > { %v1413_v25 = vadd.f32 %v1409_v4, %v600_v52 }
 0x4dd   : > { %v1470_v19 = vld [vmem:[%s2122_s20] sm:$0xff] (%p2085_p3) }
 0x4de   : > { %1417 = vst [vmem:[%s2122_s20 + $0x8] sm:$0xff] %v1413_v25 }
 0x4df   : > { %v1366_v23 = vpop.f32.mrf.mxu3  ;;  %1471 = vst [vmem:[%s1435_s24] sm:$0xff] (%p2085_p3), %v1470_v19 }
 0x4e0   : > { %v1396_v9 = vadd.f32 %v1395_v14, %v1366_v23 }
 0x4e1   : > { %v1398_v58 = vpop.f32.mrf.mxu0 }
 0x4e2   : > { %v1410_v13 = vmul.f32 %v1406_v22, %v1396_v9 }
 0x4e4   : > { %v1414_v7 = vadd.f32 %v1410_v13, %v601_v24 }
 0x4e5   : > { %v1472_v29 = vld [vmem:[%s2122_s20 + $0x8] sm:$0xff] (%p2085_p3) }
 0x4e6   : > { %1418 = vst [vmem:[%s2122_s20 + $0x10] sm:$0xff] %v1414_v7 }
 0x4e7   : > { %v1369_v31 = vpop.f32.mrf.mxu3  ;;  %1473 = vst [vmem:[%s1435_s24 + $0x10] sm:$0xff] (%p2085_p3), %v1472_v29 }
 0x4e8   : > { %v1399_v32 = vadd.f32 %v1398_v58, %v1369_v31 }
 0x4ea   : > { %v1411_v47 = vmul.f32 %v1406_v22, %v1399_v32  ;;  %1431 = sbr.rel (!%p2085_p3) target bundleno = 1271 (0x4f7), region = 64 }
 0x4ec   : > { %v1415_v18 = vadd.f32 %v1411_v47, %v602_v15 }
 0x4ed   : > { %v1474_v28 = vld [vmem:[%s2122_s20 + $0x10] sm:$0xff] (%p2085_p3) }
 0x4ee   : > { %1419 = vst [vmem:[%s2122_s20 + $0x18] sm:$0xff] %v1415_v18 }
 0x4ef   : > { %1475 = vst [vmem:[%s1435_s24 + $0x20] sm:$0xff] %v1474_v28 }
 0x4f5   : > { %v1476_v56 = vld [vmem:[%s2122_s20 + $0x18] sm:$0xff] }
 0x4f6   : > { %1477 = vst [vmem:[%s1435_s24 + $0x30] sm:$0xff] %v1476_v56 }
 0x4f7 PF: > { %s1689_s25 = sshll.u32 %s1954_s18, 5  ;;  %s1683_s14 = sshll.u32 %s1958_s19, 6 }
 0x4f8   : > { %s1489_s26 = sadd.s32 %s1689_s25, %s1683_s14  ;;  %s1492_s8 = sshll.u32 %s2124_s12, 4  ;;  %s1493_s8 = int_to_ptr.vmem [resolvable:$true] %s1492_s8 }
 0x4f9   : > { %s1684_s23 = sshll.u32 %s1489_s26, 3  ;;  %s1896_s19 = scalar_lea.hbm %s2720_s10, 1024 }
 0x4fa   : > { %s1491_s29 = scalar_lea.hbm %s2720_s10, %s1684_s23 }
 0x4fb   : > { %s1494_s21 = sshll.u32 %s1491_s29, 4  ;;  %s1495_s21 = int_to_ptr.hbm [resolvable:$true] %s1494_s21 }
 0x4fc   : > { %s1890_s20 = sshra.s32 %s1495_s21, 4  ;;  %s1891_s20 = int_to_ptr.hbm [resolvable:$true] %s1890_s20 }
 0x4fd   : > { %s1892_s24 = scalar_lea.hbm %s1891_s20, 256  ;;  %p1897_p4 = scmp.lt.s32.totalorder %s1891_s20, %s2720_s10 }
 0x4fe   : > { %p1893_p0 = scmp.ne.s32.totalorder %s1891_s20, %s1892_s24  ;;  %p1898_p5 = scmp.lt.s32.totalorder %s1896_s19, %s1892_s24 }
 0x500   : > { %p1894_p1 = pnand %p1893_p0, %p2085_p3  ;;  %p1899_p6 = por %p1898_p5, %p1897_p4 }
 0x502   : > { %p1895_p2 = pneg %p1894_p1 }
 0x504   : > { %p1900_p7 = pnand %p1899_p6, %p1895_p2 }
 0x506   : > { %1903 = shalt.err (!%p1900_p7)
}
 0x507   : > { %s1974_s11 = smov 256   ;;  %s1975_s14 = smov 16  }
 0x508   : > { %s2740_s26 = scalar_lea.sflag [#allocation7], %s2106_s13 }
 0x509   : > { %1698 = dma.vmem_to_hbm [thread:$0]  (%p2085_p3), %s1493_s8, 4096, %s1495_s21, %s2740_s26, %s1974_s11, %s1974_s11, %s1975_s14  }
 0x50a PF: > { %p1704_p9 = scmp.ge.s32.totalorder %s1970_s22, 2  ;;  %s1516_s0 = sand.u32 1, %s1942_s15  }
 0x50b   : > { %s1517_s23 = scalar_lea.sflag [#allocation7], %s1516_s0 }
 0x50c   : > { %p1701_p10 = pnand %p1704_p9, %p2094_p8 }
 0x50e   : > { %p1702_p11 = pneg %p1701_p10 }
 0x510   : > { %1937 = dma.done.wait (%p1702_p11), %s1517_s23, 4096  }
 0x511   : > { %1939 = vsyncadd (%p1702_p11), %s1517_s23, 4294963200  ;;  %s26_s22 = sadd.s32 1, %s1970_s22   ;;  %s2741_s27 = sld [smem:[#allocation13_spill]] }
 0x512   : > { %p23_p12 = scmp.ge.s32.totalorder %s26_s22, 6   ;;  %s2742_s18 = sld [smem:[#allocation9_spill]] }
 0x513   : > { %s2743_s19 = sld [smem:[#allocation10_spill]]  ;;  %s2746_s15 = smov %s1946_s16 }
 0x514   : > { %s2744_s20 = sld [smem:[#allocation11_spill]]  ;;  %s2747_s16 = smov %s1950_s17 }
 0x515   : > { %s2745_s21 = sld [smem:[#allocation12_spill]]  ;;  %25 = sbr.rel (!%p23_p12) target bundleno = 8 (0x8), region = 150 }
 0x517   : > { %s2748_s17 = smov %s2741_s27 }
 0x51a   :  { %1523 = vsyncpa [#allocation7], 1 }
 0x51b   :  { %1525 = vsyncpa [#allocation7 + $0x1], 1 }

</bundles_post_ra>
